<compile_context>
chip_gen: v7x
topology: tpu7x:2x2x1
jax: 0.10.0
libtpu: 0.0.40
codegen_flags: <defaults>
</compile_context>

<pallas_src>
import functools
import math

import jax
import jax.numpy as jnp
from jax.experimental import pallas as pl
from jax.experimental.pallas import tpu as pltpu


# ----------------------------------------------------------------------------- #
# Config (small shapes, consistent with the module)
# ----------------------------------------------------------------------------- #
N_ITEMS = 16            # number of items / graph nodes
CAT_EMB = 64            # category_emb_size
EMB = 32                # embedding_size (= hidden_size)
PRICE_BINS = 8          # price_n_bins
BATCH = 4               # number of training triples
BATCH_PAD = 8           # padded to a full sublane group; padded rows masked from loss
N_NEG = 3               # negatives per triple
LOW_K = 2
MID_K = 2
ALPHA = 0.1
BETA = 0.1
MODE = "att"            # executed path of the reference module
DATASET = "Clothing_Shoes_and_Jewelry"   # != 'Toys_and_Games' -> symmetric attention
BN_EPS = 1e-5


def _log_sigmoid_eps(x):
    # Exactly torch.log(torch.sigmoid(x) + 1e-9), with a numerically stable sigmoid.
    z = jnp.exp(-jnp.abs(x))
    sig = jnp.where(x >= 0, 1.0 / (1.0 + z), z / (1.0 + z))
    return jnp.log(sig + 1e-9)


# ----------------------------------------------------------------------------- #
# Fully-fused forward kernel (one invocation, no grid — everything VMEM resident)
# ----------------------------------------------------------------------------- #
def sr_rec_fused_kernel(
    feat_ref, data_ref, w_small_ref, w_proj_ref, scalars_ref, loss_ref,
    *, n_items, emb, batch, batch_pad, n_neg,
    low_k, mid_k, alpha, beta, bn_eps, symmetric):
    f32 = jnp.float32
    N, E, Bp, NN = n_items, emb, batch_pad, n_neg
    feat_dim = feat_ref.shape[1]

    data = data_ref[...]          # [2N + (4+2NN)*Bp, 2N]
    w_small = w_small_ref[...]    # [2E + feat_dim, E]
    w_proj = w_proj_ref[...]      # [E+1, 4E+1]

    # ---- 1. item embedding: cid2/cid3/price/nn_emb folded into one augmented matmul
    #        (bias carried by the trailing ones column of feat_aug). ----------------
    w_in = w_small[2 * E:2 * E + feat_dim, :]
    item_latent = jnp.maximum(
        jnp.dot(feat_ref[...], w_in, preferred_element_type=f32), 0.0)          # [N, E]

    # ---- 2. GCN low / mid + BatchNorm1d (training batch statistics) ---------------
    adj_self = data[0:N, 0:N]
    adj_dele = data[N:2 * N, 0:N]
    conv_low = 0.5 * adj_self
    conv_mid = -jnp.dot(adj_self, adj_dele, preferred_element_type=f32)
    h_low = item_latent
    for _ in range(low_k):
        h_low = jnp.dot(conv_low, h_low, preferred_element_type=f32)
    h_mid = item_latent
    for _ in range(mid_k):
        h_mid = jnp.dot(conv_mid, h_mid, preferred_element_type=f32)
    out_low = jnp.dot(h_low, w_small[0:E, :], preferred_element_type=f32)
    out_mid = jnp.dot(h_mid, w_small[E:2 * E, :], preferred_element_type=f32)

    # TODO(synk): BatchNorm1d learnable affine (gamma/beta) stays at its identity
    # init and running statistics are not updated (train-loss path only).
    def bn(x):
        mean = jnp.mean(x, axis=0, keepdims=True)
        var = jnp.mean((x - mean) ** 2, axis=0, keepdims=True)
        return (x - mean) * jax.lax.rsqrt(var + bn_eps)

    low = bn(out_low)                                                            # [N, E]
    mid = bn(out_mid)                                                            # [N, E]

    # ---- 3. project the stacked node table ONCE:
    #        lanes = [ emb (identity) | Q | K | rela (.@W_rela) | vf (V->tmp->out fold) ]
    table = jnp.concatenate([low, mid], axis=0)                                  # [2N, E]
    proj = (jnp.dot(table, w_proj[0:E, :], preferred_element_type=f32)
            + w_proj[E:E + 1, :])                                                # [2N, 4E+1]

    # ---- 4. ONE gather matmul for every (role, level) row group --------------------
    sel = data[2 * N:, :]                                                        # [(4+2NN)*Bp, 2N]
    g = jnp.dot(sel, proj, preferred_element_type=f32)                           # [rows, 4E+1]

    C_EMB, C_Q, C_K, C_RELA, C_VF = 0, E, 2 * E, 3 * E, 4 * E
    R_KEY_LO, R_KEY_MI = 0, Bp
    R_POS_LO, R_POS_MI = 2 * Bp, 3 * Bp
    R_NEG_LO, R_NEG_MI = 4 * Bp, (4 + NN) * Bp

    def blk(r0, c0, cols):                       # [Bp, cols]
        return g[r0:r0 + Bp, c0:c0 + cols]

    def blk3(r0, c0, cols):                      # [NN, Bp, cols]
        return g[r0:r0 + NN * Bp, c0:c0 + cols].reshape(NN, Bp, cols)

    b_rela = scalars_ref[0]
    b_out = scalars_ref[1]

    # ---- 5. low dot-product and Bilinear (rela) scores -----------------------------
    key_low_emb = blk(R_KEY_LO, C_EMB, E)
    key_mid_rela = blk(R_KEY_MI, C_RELA, E)            # = mid[key] @ W_rela
    pos_low_emb = blk(R_POS_LO, C_EMB, E)
    pos_mid_emb = blk(R_POS_MI, C_EMB, E)
    neg_low_emb = blk3(R_NEG_LO, C_EMB, E)
    neg_mid_emb = blk3(R_NEG_MI, C_EMB, E)

    low_pos_s = jnp.sum(key_low_emb * pos_low_emb, axis=-1, keepdims=True)             # [Bp,1]
    mid_pos_s = jnp.sum(key_mid_rela * pos_mid_emb, axis=-1, keepdims=True) + b_rela
    low_neg_s = jnp.sum(key_low_emb[None] * neg_low_emb, axis=-1, keepdims=True)       # [NN,Bp,1]
    mid_neg_s = jnp.sum(key_mid_rela[None] * neg_mid_emb, axis=-1, keepdims=True) + b_rela

    # ---- 6. Twostage_Attention (all calls share the projected table rows) ----------
    q_key_lo, q_key_mi = blk(R_KEY_LO, C_Q, E), blk(R_KEY_MI, C_Q, E)
    k_key_lo, k_key_mi = blk(R_KEY_LO, C_K, E), blk(R_KEY_MI, C_K, E)
    vf_key_lo, vf_key_mi = blk(R_KEY_LO, C_VF, 1), blk(R_KEY_MI, C_VF, 1)
    q_pos_lo, q_pos_mi = blk(R_POS_LO, C_Q, E), blk(R_POS_MI, C_Q, E)
    k_pos_lo, k_pos_mi = blk(R_POS_LO, C_K, E), blk(R_POS_MI, C_K, E)
    vf_pos_lo, vf_pos_mi = blk(R_POS_LO, C_VF, 1), blk(R_POS_MI, C_VF, 1)
    q_neg_lo, q_neg_mi = blk3(R_NEG_LO, C_Q, E), blk3(R_NEG_MI, C_Q, E)
    k_neg_lo, k_neg_mi = blk3(R_NEG_LO, C_K, E), blk3(R_NEG_MI, C_K, E)
    vf_neg_lo, vf_neg_mi = blk3(R_NEG_LO, C_VF, 1), blk3(R_NEG_MI, C_VF, 1)

    inv_sqrt = 1.0 / (float(E) ** 0.5)

    def two_att(q_lo, q_mi, k_lo, k_mi, vf_lo, vf_mi):
        # 2x2 attention over {low, mid}; softmax over the QUERY axis (nn.Softmax(dim=1));
        # value -> nn_tmp -> nn_output pre-folded into the scalar vf columns + b_out.
        s00 = jnp.sum(q_lo * k_lo, axis=-1, keepdims=True) * inv_sqrt
        s01 = jnp.sum(q_lo * k_mi, axis=-1, keepdims=True) * inv_sqrt
        s10 = jnp.sum(q_mi * k_lo, axis=-1, keepdims=True) * inv_sqrt
        s11 = jnp.sum(q_mi * k_mi, axis=-1, keepdims=True) * inv_sqrt
        m0 = jnp.maximum(s00, s10)
        e00, e10 = jnp.exp(s00 - m0), jnp.exp(s10 - m0)
        d0 = e00 + e10
        m1 = jnp.maximum(s01, s11)
        e01, e11 = jnp.exp(s01 - m1), jnp.exp(s11 - m1)
        d1 = e01 + e11
        out0 = (e00 / d0) * vf_lo + (e01 / d1) * vf_mi + b_out
        out1 = (e10 / d0) * vf_lo + (e11 / d1) * vf_mi + b_out
        return out0, out1

    if symmetric:
        kp0, kp1 = two_att(q_pos_lo, q_pos_mi, k_key_lo, k_key_mi, vf_key_lo, vf_key_mi)
        pk0, pk1 = two_att(q_key_lo, q_key_mi, k_pos_lo, k_pos_mi, vf_pos_lo, vf_pos_mi)
        wp0, wp1 = 0.5 * (kp0 + pk0), 0.5 * (kp1 + pk1)                          # [Bp,1]
        kn0, kn1 = two_att(q_neg_lo, q_neg_mi,
                           k_key_lo[None], k_key_mi[None],
                           vf_key_lo[None], vf_key_mi[None])                     # [NN,Bp,1]
        nk0, nk1 = two_att(q_key_lo[None], q_key_mi[None],
                           k_neg_lo, k_neg_mi, vf_neg_lo, vf_neg_mi)
        wn0, wn1 = 0.5 * (kn0 + nk0), 0.5 * (kn1 + nk1)
    else:
        wp0, wp1 = two_att(q_key_lo, q_key_mi, k_pos_lo, k_pos_mi, vf_pos_lo, vf_pos_mi)
        wn0, wn1 = two_att(q_key_lo[None], q_key_mi[None],
                           k_neg_lo, k_neg_mi, vf_neg_lo, vf_neg_mi)

    # ---- 7. L2-normalize weights, weighted scores, combined masked BPR loss --------
    eps = 1e-12
    d_p = jnp.maximum(jnp.sqrt(wp0 * wp0 + wp1 * wp1), eps)
    d_n = jnp.maximum(jnp.sqrt(wn0 * wn0 + wn1 * wn1), eps)
    ws_pos = (wp0 * low_pos_s + wp1 * mid_pos_s) / d_p                           # [Bp,1]
    ws_neg = (wn0 * low_neg_s + wn1 * mid_neg_s) / d_n                           # [NN,Bp,1]

    per_pair = (_log_sigmoid_eps(ws_pos[None] - ws_neg)
                + alpha * _log_sigmoid_eps(low_pos_s[None] - low_neg_s)
                + beta * _log_sigmoid_eps(mid_pos_s[None] - mid_neg_s))          # [NN,Bp,1]
    valid = (jax.lax.broadcasted_iota(jnp.int32, (Bp, 1), 0) < batch).astype(f32)
    masked = (per_pair * valid).reshape(NN * Bp, 1)
    loss_ref[0] = -jnp.sum(masked) * (1.0 / (n_neg * batch))


# ----------------------------------------------------------------------------- #
# Parameters (deterministic init, mimicking the PyTorch uniform ranges)
# ----------------------------------------------------------------------------- #
def init_params(key):
    ks = jax.random.split(key, 24)
    it = iter(range(24))

    def uni(shape, bound):
        return jax.random.uniform(ks[next(it)], shape, jnp.float32, -bound, bound)

    p = {}
    b_lin = 1.0 / math.sqrt(CAT_EMB)
    p["w_cid2"] = uni((CAT_EMB, EMB), b_lin)
    p["b_cid2"] = uni((1, EMB), b_lin)
    p["w_cid3"] = uni((CAT_EMB, EMB), b_lin)
    p["b_cid3"] = uni((1, EMB), b_lin)
    p["price_table"] = jax.random.normal(ks[next(it)], (PRICE_BINS, EMB), jnp.float32)

    b3 = 1.0 / math.sqrt(3 * EMB)
    p["w_emb"] = uni((3 * EMB, EMB), b3)
    p["b_emb"] = uni((1, EMB), b3)

    bg = 1.0 / math.sqrt(EMB)
    p["w_low"] = uni((EMB, EMB), bg)
    p["w_mid"] = uni((EMB, EMB), bg)

    # Twostage_Attention (only layers used on the executed path)
    p["att_wq"] = uni((EMB, EMB), bg); p["att_bq"] = uni((1, EMB), bg)
    p["att_wk"] = uni((EMB, EMB), bg); p["att_bk"] = uni((1, EMB), bg)
    p["att_wv"] = uni((EMB, EMB), bg); p["att_bv"] = uni((1, EMB), bg)
    p["att_wtmp"] = uni((EMB, EMB), bg); p["att_btmp"] = uni((1, EMB), bg)
    p["att_wout"] = uni((1, EMB), bg); p["att_bout"] = uni((1, 1), bg)

    # nn.Bilinear(EMB, EMB, 1): weight [1, E, E] -> stored as [E, E], bias [1]
    p["w_rela"] = uni((EMB, EMB), bg)
    p["b_rela"] = uni((1, 1), bg)
    return p


# ----------------------------------------------------------------------------- #
# Forward pass (train loss path) — one pallas_call with packed operands
# ----------------------------------------------------------------------------- #
def sr_rec_forward(params, features, price, adj, adj_self, adj_dele, train_set):
    del adj  # unused by the module's forward (only adj_self / adj_dele are used)
    f32 = jnp.float32
    E, N, B, NN, Bp = EMB, N_ITEMS, BATCH, N_NEG, BATCH_PAD
    symmetric = DATASET != "Toys_and_Games"

    # ---- fold embedding_cid2 / cid3 / price-embedding / nn_emb into ONE linear ----
    # relu(concat([cid2 W2 + b2, cid3 W3 + b3, price_emb]) @ W_emb + b_emb)
    #   = relu([features | price_onehot | 1] @ [w_feat ; price_proj ; b_in])
    w_emb = params["w_emb"]
    w_emb_a, w_emb_b, w_emb_c = w_emb[:E], w_emb[E:2 * E], w_emb[2 * E:]
    w_feat = jnp.concatenate([params["w_cid2"] @ w_emb_a,
                              params["w_cid3"] @ w_emb_b], axis=0)               # [2*CAT, E]
    price_proj = params["price_table"] @ w_emb_c                                 # [PBINS, E]
    b_in = params["b_cid2"] @ w_emb_a + params["b_cid3"] @ w_emb_b + params["b_emb"]
    price_onehot = (price[:, None] ==
                    jnp.arange(PRICE_BINS, dtype=price.dtype)[None, :]).astype(f32)
    feat_aug = jnp.concatenate(
        [features, price_onehot, jnp.ones((N, 1), f32)], axis=1)                 # [N, 2*CAT+PBINS+1]

    # ---- small-weight slab: [w_low ; w_mid ; w_feat ; price_proj ; b_in] -----------
    w_small = jnp.concatenate(
        [params["w_low"], params["w_mid"], w_feat, price_proj, b_in], axis=0)    # [2E+137, E]

    # ---- projection slab: [I | Wq | Wk | W_rela | wv_fold] + trailing bias row ----
    # nn_tmp -> nn_output (linear, no nonlinearity) folded to w_fold / b_out;
    # value linear folded through w_fold into a single scalar column wvf / bvf.
    w_fold = params["att_wtmp"] @ params["att_wout"].T                           # [E, 1]
    b_out = params["att_btmp"] @ params["att_wout"].T + params["att_bout"]       # [1, 1]
    wvf = params["att_wv"] @ w_fold                                              # [E, 1]
    bvf = params["att_bv"] @ w_fold                                              # [1, 1]
    w_slab = jnp.concatenate(
        [jnp.eye(E, dtype=f32), params["att_wq"], params["att_wk"],
         params["w_rela"], wvf], axis=1)                                         # [E, 4E+1]
    b_slab = jnp.concatenate(
        [jnp.zeros((1, E), f32), params["att_bq"], params["att_bk"],
         jnp.zeros((1, E), f32), bvf], axis=1)                                   # [1, 4E+1]
    w_proj = jnp.concatenate([w_slab, b_slab], axis=0)                           # [E+1, 4E+1]

    # ---- data pack: adjacency matrices + combined one-hot gather matrix ------------
    def onehot(idx, level):
        idx_full = jnp.concatenate(
            [idx.astype(jnp.int32) + level * N,
             jnp.full((Bp - B,), -1, jnp.int32)])          # padded rows -> all-zero one-hot
        return (idx_full[:, None] ==
                jnp.arange(2 * N, dtype=jnp.int32)[None, :]).astype(f32)         # [Bp, 2N]

    key_idx, pos_idx = train_set[:, 0], train_set[:, 1]
    sel_blocks = [onehot(key_idx, 0), onehot(key_idx, 1),
                  onehot(pos_idx, 0), onehot(pos_idx, 1)]
    for level in (0, 1):
        for j in range(NN):
            sel_blocks.append(onehot(train_set[:, 2 + j], level))
    sel = jnp.concatenate(sel_blocks, axis=0)                                    # [(4+2NN)*Bp, 2N]

    adj_pack = jnp.pad(jnp.concatenate([adj_self, adj_dele], axis=0),
                       ((0, 0), (0, 2 * N - N)))                                 # [2N, 2N]
    data_pack = jnp.concatenate([adj_pack, sel], axis=0)                         # [2N+(4+2NN)*Bp, 2N]

    scalars = jnp.concatenate([params["b_rela"].reshape(-1),
                               b_out.reshape(-1)]).astype(f32)                   # [2] (SMEM)

    kernel = functools.partial(
        sr_rec_fused_kernel,
        n_items=N, emb=E, batch=B, batch_pad=Bp, n_neg=NN,
        low_k=LOW_K, mid_k=MID_K, alpha=ALPHA, beta=BETA,
        bn_eps=BN_EPS, symmetric=symmetric)

    vmem = lambda: pl.BlockSpec(memory_space=pltpu.MemorySpace.VMEM)
    smem = lambda: pl.BlockSpec(memory_space=pltpu.MemorySpace.SMEM)
    loss = pl.pallas_call(
        kernel,
        out_shape=jax.ShapeDtypeStruct((1,), f32),
        in_specs=[vmem(), vmem(), vmem(), vmem(), smem()],
        out_specs=smem(),
    )(feat_aug, data_pack, w_small, w_proj, scalars)
    return loss[0]

    # TODO(synk): metrics()/inference() eval path (sklearn ndcg_score, argsort/HR@k)
    # is not implemented; only the mode='train' loss path is reproduced.


# ----------------------------------------------------------------------------- #
# Main
# ----------------------------------------------------------------------------- #
if __name__ == "__main__":
    root = jax.random.PRNGKey(0)
    k_param, k_feat, k_price, k_adj, k_adjs, k_adjd, k_train = jax.random.split(root, 7)

    params = init_params(k_param)

    features = jax.random.normal(k_feat, (N_ITEMS, 2 * CAT_EMB), jnp.float32)
    price = jax.random.randint(k_price, (N_ITEMS,), 0, PRICE_BINS, jnp.int32)
    adj = jax.random.uniform(k_adj, (N_ITEMS, N_ITEMS), jnp.float32)
    adj_self = jax.random.uniform(k_adjs, (N_ITEMS, N_ITEMS), jnp.float32) / N_ITEMS \
        + jnp.eye(N_ITEMS, dtype=jnp.float32)
    adj_dele = jax.random.uniform(k_adjd, (N_ITEMS, N_ITEMS), jnp.float32) / N_ITEMS
    train_set = jax.random.randint(k_train, (BATCH, 2 + N_NEG), 0, N_ITEMS, jnp.int32)

    fwd = jax.jit(functools.partial(sr_rec_forward, params))
    loss = fwd(features, price, adj, adj_self, adj_dele, train_set)
    jax.block_until_ready(loss)
    assert jnp.isfinite(loss), f"non-finite loss: {loss}"
    print("KERNEL_OK")
</pallas_src>

<mosaic_0001>
module attributes {stable_mosaic.version = 11 : i64} {
  func.func @sr_rec_fused_kernel(%arg0: memref<16x137xf32, #tpu.memory_space<vmem>>, %arg1: memref<112x32xf32, #tpu.memory_space<vmem>>, %arg2: memref<201x32xf32, #tpu.memory_space<vmem>>, %arg3: memref<33x129xf32, #tpu.memory_space<vmem>>, %arg4: memref<2xf32, #tpu.memory_space<smem>>, %arg5: memref<1xf32, #tpu.memory_space<smem>>) attributes {dimension_semantics = [], scalar_prefetch = 0 : i64, scratch_operands = 0 : i64, tpu.core_type = #tpu.core_type<tc>} {
    %c0 = arith.constant 0 : index
    %c0_0 = arith.constant 0 : index
    %0 = vector.load %arg1[%c0, %c0_0] : memref<112x32xf32, #tpu.memory_space<vmem>>, vector<112x32xf32>
    %c0_1 = arith.constant 0 : index
    %c0_2 = arith.constant 0 : index
    %1 = vector.load %arg2[%c0_1, %c0_2] : memref<201x32xf32, #tpu.memory_space<vmem>>, vector<201x32xf32>
    %c0_3 = arith.constant 0 : index
    %c0_4 = arith.constant 0 : index
    %2 = vector.load %arg3[%c0_3, %c0_4] : memref<33x129xf32, #tpu.memory_space<vmem>>, vector<33x129xf32>
    %3 = vector.extract_strided_slice %1 {offsets = [64, 0], sizes = [137, 32], strides = [1, 1]} : vector<201x32xf32> to vector<137x32xf32>
    %c0_5 = arith.constant 0 : index
    %c0_6 = arith.constant 0 : index
    %4 = vector.load %arg0[%c0_5, %c0_6] : memref<16x137xf32, #tpu.memory_space<vmem>>, vector<16x137xf32>
    %cst = arith.constant dense<0.000000e+00> : vector<16x32xf32>
    %5 = tpu.matmul %4, %3, %cst {dimension_numbers = #tpu.dot_dimension_numbers<[1], [0], [0], [1], [0, 0, 1, 1], [], []>} : vector<16x137xf32>, vector<137x32xf32>, vector<16x32xf32> -> vector<16x32xf32>
    %cst_7 = arith.constant 0.000000e+00 : f32
    %6 = vector.broadcast %cst_7 : f32 to vector<16x32xf32>
    %7 = arith.maximumf %5, %6 : vector<16x32xf32>
    %8 = vector.extract_strided_slice %0 {offsets = [0, 0], sizes = [16, 16], strides = [1, 1]} : vector<112x32xf32> to vector<16x16xf32>
    %9 = vector.extract_strided_slice %0 {offsets = [16, 0], sizes = [16, 16], strides = [1, 1]} : vector<112x32xf32> to vector<16x16xf32>
    %cst_8 = arith.constant 5.000000e-01 : f32
    %10 = vector.broadcast %cst_8 : f32 to vector<16x16xf32>
    %11 = arith.mulf %10, %8 : vector<16x16xf32>
    %cst_9 = arith.constant dense<0.000000e+00> : vector<16x16xf32>
    %12 = tpu.matmul %8, %9, %cst_9 {dimension_numbers = #tpu.dot_dimension_numbers<[1], [0], [0], [1], [0, 0, 1, 1], [], []>} : vector<16x16xf32>, vector<16x16xf32>, vector<16x16xf32> -> vector<16x16xf32>
    %cst_10 = arith.constant 0.000000e+00 : f32
    %13 = vector.broadcast %cst_10 : f32 to vector<16x16xf32>
    %14 = arith.subf %13, %12 : vector<16x16xf32>
    %cst_11 = arith.constant dense<0.000000e+00> : vector<16x32xf32>
    %15 = tpu.matmul %11, %7, %cst_11 {dimension_numbers = #tpu.dot_dimension_numbers<[1], [0], [0], [1], [0, 0, 1, 1], [], []>} : vector<16x16xf32>, vector<16x32xf32>, vector<16x32xf32> -> vector<16x32xf32>
    %cst_12 = arith.constant dense<0.000000e+00> : vector<16x32xf32>
    %16 = tpu.matmul %11, %15, %cst_12 {dimension_numbers = #tpu.dot_dimension_numbers<[1], [0], [0], [1], [0, 0, 1, 1], [], []>} : vector<16x16xf32>, vector<16x32xf32>, vector<16x32xf32> -> vector<16x32xf32>
    %cst_13 = arith.constant dense<0.000000e+00> : vector<16x32xf32>
    %17 = tpu.matmul %14, %7, %cst_13 {dimension_numbers = #tpu.dot_dimension_numbers<[1], [0], [0], [1], [0, 0, 1, 1], [], []>} : vector<16x16xf32>, vector<16x32xf32>, vector<16x32xf32> -> vector<16x32xf32>
    %cst_14 = arith.constant dense<0.000000e+00> : vector<16x32xf32>
    %18 = tpu.matmul %14, %17, %cst_14 {dimension_numbers = #tpu.dot_dimension_numbers<[1], [0], [0], [1], [0, 0, 1, 1], [], []>} : vector<16x16xf32>, vector<16x32xf32>, vector<16x32xf32> -> vector<16x32xf32>
    %19 = vector.extract_strided_slice %1 {offsets = [0, 0], sizes = [32, 32], strides = [1, 1]} : vector<201x32xf32> to vector<32x32xf32>
    %cst_15 = arith.constant dense<0.000000e+00> : vector<16x32xf32>
    %20 = tpu.matmul %16, %19, %cst_15 {dimension_numbers = #tpu.dot_dimension_numbers<[1], [0], [0], [1], [0, 0, 1, 1], [], []>} : vector<16x32xf32>, vector<32x32xf32>, vector<16x32xf32> -> vector<16x32xf32>
    %21 = vector.extract_strided_slice %1 {offsets = [32, 0], sizes = [32, 32], strides = [1, 1]} : vector<201x32xf32> to vector<32x32xf32>
    %cst_16 = arith.constant dense<0.000000e+00> : vector<16x32xf32>
    %22 = tpu.matmul %18, %21, %cst_16 {dimension_numbers = #tpu.dot_dimension_numbers<[1], [0], [0], [1], [0, 0, 1, 1], [], []>} : vector<16x32xf32>, vector<32x32xf32>, vector<16x32xf32> -> vector<16x32xf32>
    %cst_17 = arith.constant dense<0.000000e+00> : vector<32xf32>
    %23 = vector.multi_reduction <add>, %20, %cst_17 [0] : vector<16x32xf32> to vector<32xf32>
    %24 = vector.shape_cast %23 : vector<32xf32> to vector<1x32xf32>
    %cst_18 = arith.constant 1.600000e+01 : f32
    %25 = vector.broadcast %cst_18 : f32 to vector<1x32xf32>
    %26 = arith.divf %24, %25 : vector<1x32xf32>
    %27 = vector.broadcast %26 : vector<1x32xf32> to vector<16x32xf32>
    %28 = arith.subf %20, %27 : vector<16x32xf32>
    %29 = arith.mulf %28, %28 : vector<16x32xf32>
    %cst_19 = arith.constant dense<0.000000e+00> : vector<32xf32>
    %30 = vector.multi_reduction <add>, %29, %cst_19 [0] : vector<16x32xf32> to vector<32xf32>
    %31 = vector.shape_cast %30 : vector<32xf32> to vector<1x32xf32>
    %cst_20 = arith.constant 1.600000e+01 : f32
    %32 = vector.broadcast %cst_20 : f32 to vector<1x32xf32>
    %33 = arith.divf %31, %32 : vector<1x32xf32>
    %34 = vector.broadcast %26 : vector<1x32xf32> to vector<16x32xf32>
    %35 = arith.subf %20, %34 : vector<16x32xf32>
    %cst_21 = arith.constant 9.99999974E-6 : f32
    %36 = vector.broadcast %cst_21 : f32 to vector<1x32xf32>
    %37 = arith.addf %33, %36 : vector<1x32xf32>
    %38 = math.rsqrt %37 : vector<1x32xf32>
    %39 = vector.broadcast %38 : vector<1x32xf32> to vector<16x32xf32>
    %40 = arith.mulf %35, %39 : vector<16x32xf32>
    %cst_22 = arith.constant dense<0.000000e+00> : vector<32xf32>
    %41 = vector.multi_reduction <add>, %22, %cst_22 [0] : vector<16x32xf32> to vector<32xf32>
    %42 = vector.shape_cast %41 : vector<32xf32> to vector<1x32xf32>
    %cst_23 = arith.constant 1.600000e+01 : f32
    %43 = vector.broadcast %cst_23 : f32 to vector<1x32xf32>
    %44 = arith.divf %42, %43 : vector<1x32xf32>
    %45 = vector.broadcast %44 : vector<1x32xf32> to vector<16x32xf32>
    %46 = arith.subf %22, %45 : vector<16x32xf32>
    %47 = arith.mulf %46, %46 : vector<16x32xf32>
    %cst_24 = arith.constant dense<0.000000e+00> : vector<32xf32>
    %48 = vector.multi_reduction <add>, %47, %cst_24 [0] : vector<16x32xf32> to vector<32xf32>
    %49 = vector.shape_cast %48 : vector<32xf32> to vector<1x32xf32>
    %cst_25 = arith.constant 1.600000e+01 : f32
    %50 = vector.broadcast %cst_25 : f32 to vector<1x32xf32>
    %51 = arith.divf %49, %50 : vector<1x32xf32>
    %52 = vector.broadcast %44 : vector<1x32xf32> to vector<16x32xf32>
    %53 = arith.subf %22, %52 : vector<16x32xf32>
    %cst_26 = arith.constant 9.99999974E-6 : f32
    %54 = vector.broadcast %cst_26 : f32 to vector<1x32xf32>
    %55 = arith.addf %51, %54 : vector<1x32xf32>
    %56 = math.rsqrt %55 : vector<1x32xf32>
    %57 = vector.broadcast %56 : vector<1x32xf32> to vector<16x32xf32>
    %58 = arith.mulf %53, %57 : vector<16x32xf32>
    %59 = tpu.concatenate %40, %58 in 0 : vector<16x32xf32>, vector<16x32xf32> -> vector<32x32xf32>
    %60 = vector.extract_strided_slice %2 {offsets = [0, 0], sizes = [32, 129], strides = [1, 1]} : vector<33x129xf32> to vector<32x129xf32>
    %cst_27 = arith.constant dense<0.000000e+00> : vector<32x129xf32>
    %61 = tpu.matmul %59, %60, %cst_27 {dimension_numbers = #tpu.dot_dimension_numbers<[1], [0], [0], [1], [0, 0, 1, 1], [], []>} : vector<32x32xf32>, vector<32x129xf32>, vector<32x129xf32> -> vector<32x129xf32>
    %62 = vector.extract_strided_slice %2 {offsets = [32, 0], sizes = [1, 129], strides = [1, 1]} : vector<33x129xf32> to vector<1x129xf32>
    %63 = vector.broadcast %62 : vector<1x129xf32> to vector<32x129xf32>
    %64 = arith.addf %61, %63 : vector<32x129xf32>
    %65 = vector.extract_strided_slice %0 {offsets = [32, 0], sizes = [80, 32], strides = [1, 1]} : vector<112x32xf32> to vector<80x32xf32>
    %cst_28 = arith.constant dense<0.000000e+00> : vector<80x129xf32>
    %66 = tpu.matmul %65, %64, %cst_28 {dimension_numbers = #tpu.dot_dimension_numbers<[1], [0], [0], [1], [0, 0, 1, 1], [], []>} : vector<80x32xf32>, vector<32x129xf32>, vector<80x129xf32> -> vector<80x129xf32>
    %c0_29 = arith.constant 0 : index
    %67 = memref.load %arg4[%c0_29] : memref<2xf32, #tpu.memory_space<smem>>
    %c1 = arith.constant 1 : index
    %68 = memref.load %arg4[%c1] : memref<2xf32, #tpu.memory_space<smem>>
    %69 = vector.extract_strided_slice %66 {offsets = [0, 0], sizes = [8, 32], strides = [1, 1]} : vector<80x129xf32> to vector<8x32xf32>
    %70 = vector.extract_strided_slice %66 {offsets = [8, 96], sizes = [8, 32], strides = [1, 1]} : vector<80x129xf32> to vector<8x32xf32>
    %71 = vector.extract_strided_slice %66 {offsets = [16, 0], sizes = [8, 32], strides = [1, 1]} : vector<80x129xf32> to vector<8x32xf32>
    %72 = vector.extract_strided_slice %66 {offsets = [24, 0], sizes = [8, 32], strides = [1, 1]} : vector<80x129xf32> to vector<8x32xf32>
    %73 = vector.extract_strided_slice %66 {offsets = [32, 0], sizes = [24, 32], strides = [1, 1]} : vector<80x129xf32> to vector<24x32xf32>
    %74 = vector.shape_cast %73 : vector<24x32xf32> to vector<3x8x32xf32>
    %75 = vector.extract_strided_slice %66 {offsets = [56, 0], sizes = [24, 32], strides = [1, 1]} : vector<80x129xf32> to vector<24x32xf32>
    %76 = vector.shape_cast %75 : vector<24x32xf32> to vector<3x8x32xf32>
    %77 = arith.mulf %69, %71 : vector<8x32xf32>
    %cst_30 = arith.constant dense<0.000000e+00> : vector<8xf32>
    %78 = vector.multi_reduction <add>, %77, %cst_30 [1] : vector<8x32xf32> to vector<8xf32>
    %79 = vector.shape_cast %78 : vector<8xf32> to vector<8x1xf32>
    %80 = arith.mulf %70, %72 : vector<8x32xf32>
    %cst_31 = arith.constant dense<0.000000e+00> : vector<8xf32>
    %81 = vector.multi_reduction <add>, %80, %cst_31 [1] : vector<8x32xf32> to vector<8xf32>
    %82 = vector.shape_cast %81 : vector<8xf32> to vector<8x1xf32>
    %83 = vector.broadcast %67 : f32 to vector<8x1xf32>
    %84 = arith.addf %82, %83 : vector<8x1xf32>
    %85 = vector.shape_cast %69 : vector<8x32xf32> to vector<1x8x32xf32>
    %86 = vector.broadcast %85 : vector<1x8x32xf32> to vector<3x8x32xf32>
    %87 = arith.mulf %86, %74 : vector<3x8x32xf32>
    %cst_32 = arith.constant dense<0.000000e+00> : vector<3x8xf32>
    %88 = vector.multi_reduction <add>, %87, %cst_32 [2] : vector<3x8x32xf32> to vector<3x8xf32>
    %89 = vector.shape_cast %88 : vector<3x8xf32> to vector<3x8x1xf32>
    %90 = vector.shape_cast %70 : vector<8x32xf32> to vector<1x8x32xf32>
    %91 = vector.broadcast %90 : vector<1x8x32xf32> to vector<3x8x32xf32>
    %92 = arith.mulf %91, %76 : vector<3x8x32xf32>
    %cst_33 = arith.constant dense<0.000000e+00> : vector<3x8xf32>
    %93 = vector.multi_reduction <add>, %92, %cst_33 [2] : vector<3x8x32xf32> to vector<3x8xf32>
    %94 = vector.shape_cast %93 : vector<3x8xf32> to vector<3x8x1xf32>
    %95 = vector.broadcast %67 : f32 to vector<3x8x1xf32>
    %96 = arith.addf %94, %95 : vector<3x8x1xf32>
    %97 = vector.extract_strided_slice %66 {offsets = [0, 32], sizes = [8, 32], strides = [1, 1]} : vector<80x129xf32> to vector<8x32xf32>
    %98 = vector.extract_strided_slice %66 {offsets = [8, 32], sizes = [8, 32], strides = [1, 1]} : vector<80x129xf32> to vector<8x32xf32>
    %99 = vector.extract_strided_slice %66 {offsets = [0, 64], sizes = [8, 32], strides = [1, 1]} : vector<80x129xf32> to vector<8x32xf32>
    %100 = vector.extract_strided_slice %66 {offsets = [8, 64], sizes = [8, 32], strides = [1, 1]} : vector<80x129xf32> to vector<8x32xf32>
    %101 = vector.extract_strided_slice %66 {offsets = [0, 128], sizes = [8, 1], strides = [1, 1]} : vector<80x129xf32> to vector<8x1xf32>
    %102 = vector.extract_strided_slice %66 {offsets = [8, 128], sizes = [8, 1], strides = [1, 1]} : vector<80x129xf32> to vector<8x1xf32>
    %103 = vector.extract_strided_slice %66 {offsets = [16, 32], sizes = [8, 32], strides = [1, 1]} : vector<80x129xf32> to vector<8x32xf32>
    %104 = vector.extract_strided_slice %66 {offsets = [24, 32], sizes = [8, 32], strides = [1, 1]} : vector<80x129xf32> to vector<8x32xf32>
    %105 = vector.extract_strided_slice %66 {offsets = [16, 64], sizes = [8, 32], strides = [1, 1]} : vector<80x129xf32> to vector<8x32xf32>
    %106 = vector.extract_strided_slice %66 {offsets = [24, 64], sizes = [8, 32], strides = [1, 1]} : vector<80x129xf32> to vector<8x32xf32>
    %107 = vector.extract_strided_slice %66 {offsets = [16, 128], sizes = [8, 1], strides = [1, 1]} : vector<80x129xf32> to vector<8x1xf32>
    %108 = vector.extract_strided_slice %66 {offsets = [24, 128], sizes = [8, 1], strides = [1, 1]} : vector<80x129xf32> to vector<8x1xf32>
    %109 = vector.extract_strided_slice %66 {offsets = [32, 32], sizes = [24, 32], strides = [1, 1]} : vector<80x129xf32> to vector<24x32xf32>
    %110 = vector.shape_cast %109 : vector<24x32xf32> to vector<3x8x32xf32>
    %111 = vector.extract_strided_slice %66 {offsets = [56, 32], sizes = [24, 32], strides = [1, 1]} : vector<80x129xf32> to vector<24x32xf32>
    %112 = vector.shape_cast %111 : vector<24x32xf32> to vector<3x8x32xf32>
    %113 = vector.extract_strided_slice %66 {offsets = [32, 64], sizes = [24, 32], strides = [1, 1]} : vector<80x129xf32> to vector<24x32xf32>
    %114 = vector.shape_cast %113 : vector<24x32xf32> to vector<3x8x32xf32>
    %115 = vector.extract_strided_slice %66 {offsets = [56, 64], sizes = [24, 32], strides = [1, 1]} : vector<80x129xf32> to vector<24x32xf32>
    %116 = vector.shape_cast %115 : vector<24x32xf32> to vector<3x8x32xf32>
    %117 = vector.extract_strided_slice %66 {offsets = [32, 128], sizes = [24, 1], strides = [1, 1]} : vector<80x129xf32> to vector<24x1xf32>
    %118 = vector.shape_cast %117 : vector<24x1xf32> to vector<3x8x1xf32>
    %119 = vector.extract_strided_slice %66 {offsets = [56, 128], sizes = [24, 1], strides = [1, 1]} : vector<80x129xf32> to vector<24x1xf32>
    %120 = vector.shape_cast %119 : vector<24x1xf32> to vector<3x8x1xf32>
    %121 = arith.mulf %103, %99 : vector<8x32xf32>
    %cst_34 = arith.constant dense<0.000000e+00> : vector<8xf32>
    %122 = vector.multi_reduction <add>, %121, %cst_34 [1] : vector<8x32xf32> to vector<8xf32>
    %123 = vector.shape_cast %122 : vector<8xf32> to vector<8x1xf32>
    %cst_35 = arith.constant 0.176776692 : f32
    %124 = vector.broadcast %cst_35 : f32 to vector<8x1xf32>
    %125 = arith.mulf %123, %124 : vector<8x1xf32>
    %126 = arith.mulf %103, %100 : vector<8x32xf32>
    %cst_36 = arith.constant dense<0.000000e+00> : vector<8xf32>
    %127 = vector.multi_reduction <add>, %126, %cst_36 [1] : vector<8x32xf32> to vector<8xf32>
    %128 = vector.shape_cast %127 : vector<8xf32> to vector<8x1xf32>
    %cst_37 = arith.constant 0.176776692 : f32
    %129 = vector.broadcast %cst_37 : f32 to vector<8x1xf32>
    %130 = arith.mulf %128, %129 : vector<8x1xf32>
    %131 = arith.mulf %104, %99 : vector<8x32xf32>
    %cst_38 = arith.constant dense<0.000000e+00> : vector<8xf32>
    %132 = vector.multi_reduction <add>, %131, %cst_38 [1] : vector<8x32xf32> to vector<8xf32>
    %133 = vector.shape_cast %132 : vector<8xf32> to vector<8x1xf32>
    %cst_39 = arith.constant 0.176776692 : f32
    %134 = vector.broadcast %cst_39 : f32 to vector<8x1xf32>
    %135 = arith.mulf %133, %134 : vector<8x1xf32>
    %136 = arith.mulf %104, %100 : vector<8x32xf32>
    %cst_40 = arith.constant dense<0.000000e+00> : vector<8xf32>
    %137 = vector.multi_reduction <add>, %136, %cst_40 [1] : vector<8x32xf32> to vector<8xf32>
    %138 = vector.shape_cast %137 : vector<8xf32> to vector<8x1xf32>
    %cst_41 = arith.constant 0.176776692 : f32
    %139 = vector.broadcast %cst_41 : f32 to vector<8x1xf32>
    %140 = arith.mulf %138, %139 : vector<8x1xf32>
    %141 = arith.maximumf %125, %135 : vector<8x1xf32>
    %142 = arith.subf %125, %141 : vector<8x1xf32>
    %143 = math.exp %142 : vector<8x1xf32>
    %144 = arith.subf %135, %141 : vector<8x1xf32>
    %145 = math.exp %144 : vector<8x1xf32>
    %146 = arith.addf %143, %145 : vector<8x1xf32>
    %147 = arith.maximumf %130, %140 : vector<8x1xf32>
    %148 = arith.subf %130, %147 : vector<8x1xf32>
    %149 = math.exp %148 : vector<8x1xf32>
    %150 = arith.subf %140, %147 : vector<8x1xf32>
    %151 = math.exp %150 : vector<8x1xf32>
    %152 = arith.addf %149, %151 : vector<8x1xf32>
    %153 = arith.divf %143, %146 : vector<8x1xf32>
    %154 = arith.mulf %153, %101 : vector<8x1xf32>
    %155 = arith.divf %149, %152 : vector<8x1xf32>
    %156 = arith.mulf %155, %102 : vector<8x1xf32>
    %157 = arith.addf %154, %156 : vector<8x1xf32>
    %158 = vector.broadcast %68 : f32 to vector<8x1xf32>
    %159 = arith.addf %157, %158 : vector<8x1xf32>
    %160 = arith.divf %145, %146 : vector<8x1xf32>
    %161 = arith.mulf %160, %101 : vector<8x1xf32>
    %162 = arith.divf %151, %152 : vector<8x1xf32>
    %163 = arith.mulf %162, %102 : vector<8x1xf32>
    %164 = arith.addf %161, %163 : vector<8x1xf32>
    %165 = vector.broadcast %68 : f32 to vector<8x1xf32>
    %166 = arith.addf %164, %165 : vector<8x1xf32>
    %167 = arith.mulf %97, %105 : vector<8x32xf32>
    %cst_42 = arith.constant dense<0.000000e+00> : vector<8xf32>
    %168 = vector.multi_reduction <add>, %167, %cst_42 [1] : vector<8x32xf32> to vector<8xf32>
    %169 = vector.shape_cast %168 : vector<8xf32> to vector<8x1xf32>
    %cst_43 = arith.constant 0.176776692 : f32
    %170 = vector.broadcast %cst_43 : f32 to vector<8x1xf32>
    %171 = arith.mulf %169, %170 : vector<8x1xf32>
    %172 = arith.mulf %97, %106 : vector<8x32xf32>
    %cst_44 = arith.constant dense<0.000000e+00> : vector<8xf32>
    %173 = vector.multi_reduction <add>, %172, %cst_44 [1] : vector<8x32xf32> to vector<8xf32>
    %174 = vector.shape_cast %173 : vector<8xf32> to vector<8x1xf32>
    %cst_45 = arith.constant 0.176776692 : f32
    %175 = vector.broadcast %cst_45 : f32 to vector<8x1xf32>
    %176 = arith.mulf %174, %175 : vector<8x1xf32>
    %177 = arith.mulf %98, %105 : vector<8x32xf32>
    %cst_46 = arith.constant dense<0.000000e+00> : vector<8xf32>
    %178 = vector.multi_reduction <add>, %177, %cst_46 [1] : vector<8x32xf32> to vector<8xf32>
    %179 = vector.shape_cast %178 : vector<8xf32> to vector<8x1xf32>
    %cst_47 = arith.constant 0.176776692 : f32
    %180 = vector.broadcast %cst_47 : f32 to vector<8x1xf32>
    %181 = arith.mulf %179, %180 : vector<8x1xf32>
    %182 = arith.mulf %98, %106 : vector<8x32xf32>
    %cst_48 = arith.constant dense<0.000000e+00> : vector<8xf32>
    %183 = vector.multi_reduction <add>, %182, %cst_48 [1] : vector<8x32xf32> to vector<8xf32>
    %184 = vector.shape_cast %183 : vector<8xf32> to vector<8x1xf32>
    %cst_49 = arith.constant 0.176776692 : f32
    %185 = vector.broadcast %cst_49 : f32 to vector<8x1xf32>
    %186 = arith.mulf %184, %185 : vector<8x1xf32>
    %187 = arith.maximumf %171, %181 : vector<8x1xf32>
    %188 = arith.subf %171, %187 : vector<8x1xf32>
    %189 = math.exp %188 : vector<8x1xf32>
    %190 = arith.subf %181, %187 : vector<8x1xf32>
    %191 = math.exp %190 : vector<8x1xf32>
    %192 = arith.addf %189, %191 : vector<8x1xf32>
    %193 = arith.maximumf %176, %186 : vector<8x1xf32>
    %194 = arith.subf %176, %193 : vector<8x1xf32>
    %195 = math.exp %194 : vector<8x1xf32>
    %196 = arith.subf %186, %193 : vector<8x1xf32>
    %197 = math.exp %196 : vector<8x1xf32>
    %198 = arith.addf %195, %197 : vector<8x1xf32>
    %199 = arith.divf %189, %192 : vector<8x1xf32>
    %200 = arith.mulf %199, %107 : vector<8x1xf32>
    %201 = arith.divf %195, %198 : vector<8x1xf32>
    %202 = arith.mulf %201, %108 : vector<8x1xf32>
    %203 = arith.addf %200, %202 : vector<8x1xf32>
    %204 = vector.broadcast %68 : f32 to vector<8x1xf32>
    %205 = arith.addf %203, %204 : vector<8x1xf32>
    %206 = arith.divf %191, %192 : vector<8x1xf32>
    %207 = arith.mulf %206, %107 : vector<8x1xf32>
    %208 = arith.divf %197, %198 : vector<8x1xf32>
    %209 = arith.mulf %208, %108 : vector<8x1xf32>
    %210 = arith.addf %207, %209 : vector<8x1xf32>
    %211 = vector.broadcast %68 : f32 to vector<8x1xf32>
    %212 = arith.addf %210, %211 : vector<8x1xf32>
    %213 = arith.addf %159, %205 : vector<8x1xf32>
    %cst_50 = arith.constant 5.000000e-01 : f32
    %214 = vector.broadcast %cst_50 : f32 to vector<8x1xf32>
    %215 = arith.mulf %214, %213 : vector<8x1xf32>
    %216 = arith.addf %166, %212 : vector<8x1xf32>
    %cst_51 = arith.constant 5.000000e-01 : f32
    %217 = vector.broadcast %cst_51 : f32 to vector<8x1xf32>
    %218 = arith.mulf %217, %216 : vector<8x1xf32>
    %219 = vector.shape_cast %99 : vector<8x32xf32> to vector<1x8x32xf32>
    %220 = vector.shape_cast %100 : vector<8x32xf32> to vector<1x8x32xf32>
    %221 = vector.shape_cast %101 : vector<8x1xf32> to vector<1x8x1xf32>
    %222 = vector.shape_cast %102 : vector<8x1xf32> to vector<1x8x1xf32>
    %223 = vector.broadcast %219 : vector<1x8x32xf32> to vector<3x8x32xf32>
    %224 = arith.mulf %110, %223 : vector<3x8x32xf32>
    %cst_52 = arith.constant dense<0.000000e+00> : vector<3x8xf32>
    %225 = vector.multi_reduction <add>, %224, %cst_52 [2] : vector<3x8x32xf32> to vector<3x8xf32>
    %226 = vector.shape_cast %225 : vector<3x8xf32> to vector<3x8x1xf32>
    %cst_53 = arith.constant 0.176776692 : f32
    %227 = vector.broadcast %cst_53 : f32 to vector<3x8x1xf32>
    %228 = arith.mulf %226, %227 : vector<3x8x1xf32>
    %229 = vector.broadcast %220 : vector<1x8x32xf32> to vector<3x8x32xf32>
    %230 = arith.mulf %110, %229 : vector<3x8x32xf32>
    %cst_54 = arith.constant dense<0.000000e+00> : vector<3x8xf32>
    %231 = vector.multi_reduction <add>, %230, %cst_54 [2] : vector<3x8x32xf32> to vector<3x8xf32>
    %232 = vector.shape_cast %231 : vector<3x8xf32> to vector<3x8x1xf32>
    %cst_55 = arith.constant 0.176776692 : f32
    %233 = vector.broadcast %cst_55 : f32 to vector<3x8x1xf32>
    %234 = arith.mulf %232, %233 : vector<3x8x1xf32>
    %235 = vector.broadcast %219 : vector<1x8x32xf32> to vector<3x8x32xf32>
    %236 = arith.mulf %112, %235 : vector<3x8x32xf32>
    %cst_56 = arith.constant dense<0.000000e+00> : vector<3x8xf32>
    %237 = vector.multi_reduction <add>, %236, %cst_56 [2] : vector<3x8x32xf32> to vector<3x8xf32>
    %238 = vector.shape_cast %237 : vector<3x8xf32> to vector<3x8x1xf32>
    %cst_57 = arith.constant 0.176776692 : f32
    %239 = vector.broadcast %cst_57 : f32 to vector<3x8x1xf32>
    %240 = arith.mulf %238, %239 : vector<3x8x1xf32>
    %241 = vector.broadcast %220 : vector<1x8x32xf32> to vector<3x8x32xf32>
    %242 = arith.mulf %112, %241 : vector<3x8x32xf32>
    %cst_58 = arith.constant dense<0.000000e+00> : vector<3x8xf32>
    %243 = vector.multi_reduction <add>, %242, %cst_58 [2] : vector<3x8x32xf32> to vector<3x8xf32>
    %244 = vector.shape_cast %243 : vector<3x8xf32> to vector<3x8x1xf32>
    %cst_59 = arith.constant 0.176776692 : f32
    %245 = vector.broadcast %cst_59 : f32 to vector<3x8x1xf32>
    %246 = arith.mulf %244, %245 : vector<3x8x1xf32>
    %247 = arith.maximumf %228, %240 : vector<3x8x1xf32>
    %248 = arith.subf %228, %247 : vector<3x8x1xf32>
    %249 = math.exp %248 : vector<3x8x1xf32>
    %250 = arith.subf %240, %247 : vector<3x8x1xf32>
    %251 = math.exp %250 : vector<3x8x1xf32>
    %252 = arith.addf %249, %251 : vector<3x8x1xf32>
    %253 = arith.maximumf %234, %246 : vector<3x8x1xf32>
    %254 = arith.subf %234, %253 : vector<3x8x1xf32>
    %255 = math.exp %254 : vector<3x8x1xf32>
    %256 = arith.subf %246, %253 : vector<3x8x1xf32>
    %257 = math.exp %256 : vector<3x8x1xf32>
    %258 = arith.addf %255, %257 : vector<3x8x1xf32>
    %259 = arith.divf %249, %252 : vector<3x8x1xf32>
    %260 = vector.broadcast %221 : vector<1x8x1xf32> to vector<3x8x1xf32>
    %261 = arith.mulf %259, %260 : vector<3x8x1xf32>
    %262 = arith.divf %255, %258 : vector<3x8x1xf32>
    %263 = vector.broadcast %222 : vector<1x8x1xf32> to vector<3x8x1xf32>
    %264 = arith.mulf %262, %263 : vector<3x8x1xf32>
    %265 = arith.addf %261, %264 : vector<3x8x1xf32>
    %266 = vector.broadcast %68 : f32 to vector<3x8x1xf32>
    %267 = arith.addf %265, %266 : vector<3x8x1xf32>
    %268 = arith.divf %251, %252 : vector<3x8x1xf32>
    %269 = vector.broadcast %221 : vector<1x8x1xf32> to vector<3x8x1xf32>
    %270 = arith.mulf %268, %269 : vector<3x8x1xf32>
    %271 = arith.divf %257, %258 : vector<3x8x1xf32>
    %272 = vector.broadcast %222 : vector<1x8x1xf32> to vector<3x8x1xf32>
    %273 = arith.mulf %271, %272 : vector<3x8x1xf32>
    %274 = arith.addf %270, %273 : vector<3x8x1xf32>
    %275 = vector.broadcast %68 : f32 to vector<3x8x1xf32>
    %276 = arith.addf %274, %275 : vector<3x8x1xf32>
    %277 = vector.shape_cast %97 : vector<8x32xf32> to vector<1x8x32xf32>
    %278 = vector.shape_cast %98 : vector<8x32xf32> to vector<1x8x32xf32>
    %279 = vector.broadcast %277 : vector<1x8x32xf32> to vector<3x8x32xf32>
    %280 = arith.mulf %279, %114 : vector<3x8x32xf32>
    %cst_60 = arith.constant dense<0.000000e+00> : vector<3x8xf32>
    %281 = vector.multi_reduction <add>, %280, %cst_60 [2] : vector<3x8x32xf32> to vector<3x8xf32>
    %282 = vector.shape_cast %281 : vector<3x8xf32> to vector<3x8x1xf32>
    %cst_61 = arith.constant 0.176776692 : f32
    %283 = vector.broadcast %cst_61 : f32 to vector<3x8x1xf32>
    %284 = arith.mulf %282, %283 : vector<3x8x1xf32>
    %285 = vector.broadcast %277 : vector<1x8x32xf32> to vector<3x8x32xf32>
    %286 = arith.mulf %285, %116 : vector<3x8x32xf32>
    %cst_62 = arith.constant dense<0.000000e+00> : vector<3x8xf32>
    %287 = vector.multi_reduction <add>, %286, %cst_62 [2] : vector<3x8x32xf32> to vector<3x8xf32>
    %288 = vector.shape_cast %287 : vector<3x8xf32> to vector<3x8x1xf32>
    %cst_63 = arith.constant 0.176776692 : f32
    %289 = vector.broadcast %cst_63 : f32 to vector<3x8x1xf32>
    %290 = arith.mulf %288, %289 : vector<3x8x1xf32>
    %291 = vector.broadcast %278 : vector<1x8x32xf32> to vector<3x8x32xf32>
    %292 = arith.mulf %291, %114 : vector<3x8x32xf32>
    %cst_64 = arith.constant dense<0.000000e+00> : vector<3x8xf32>
    %293 = vector.multi_reduction <add>, %292, %cst_64 [2] : vector<3x8x32xf32> to vector<3x8xf32>
    %294 = vector.shape_cast %293 : vector<3x8xf32> to vector<3x8x1xf32>
    %cst_65 = arith.constant 0.176776692 : f32
    %295 = vector.broadcast %cst_65 : f32 to vector<3x8x1xf32>
    %296 = arith.mulf %294, %295 : vector<3x8x1xf32>
    %297 = vector.broadcast %278 : vector<1x8x32xf32> to vector<3x8x32xf32>
    %298 = arith.mulf %297, %116 : vector<3x8x32xf32>
    %cst_66 = arith.constant dense<0.000000e+00> : vector<3x8xf32>
    %299 = vector.multi_reduction <add>, %298, %cst_66 [2] : vector<3x8x32xf32> to vector<3x8xf32>
    %300 = vector.shape_cast %299 : vector<3x8xf32> to vector<3x8x1xf32>
    %cst_67 = arith.constant 0.176776692 : f32
    %301 = vector.broadcast %cst_67 : f32 to vector<3x8x1xf32>
    %302 = arith.mulf %300, %301 : vector<3x8x1xf32>
    %303 = arith.maximumf %284, %296 : vector<3x8x1xf32>
    %304 = arith.subf %284, %303 : vector<3x8x1xf32>
    %305 = math.exp %304 : vector<3x8x1xf32>
    %306 = arith.subf %296, %303 : vector<3x8x1xf32>
    %307 = math.exp %306 : vector<3x8x1xf32>
    %308 = arith.addf %305, %307 : vector<3x8x1xf32>
    %309 = arith.maximumf %290, %302 : vector<3x8x1xf32>
    %310 = arith.subf %290, %309 : vector<3x8x1xf32>
    %311 = math.exp %310 : vector<3x8x1xf32>
    %312 = arith.subf %302, %309 : vector<3x8x1xf32>
    %313 = math.exp %312 : vector<3x8x1xf32>
    %314 = arith.addf %311, %313 : vector<3x8x1xf32>
    %315 = arith.divf %305, %308 : vector<3x8x1xf32>
    %316 = arith.mulf %315, %118 : vector<3x8x1xf32>
    %317 = arith.divf %311, %314 : vector<3x8x1xf32>
    %318 = arith.mulf %317, %120 : vector<3x8x1xf32>
    %319 = arith.addf %316, %318 : vector<3x8x1xf32>
    %320 = vector.broadcast %68 : f32 to vector<3x8x1xf32>
    %321 = arith.addf %319, %320 : vector<3x8x1xf32>
    %322 = arith.divf %307, %308 : vector<3x8x1xf32>
    %323 = arith.mulf %322, %118 : vector<3x8x1xf32>
    %324 = arith.divf %313, %314 : vector<3x8x1xf32>
    %325 = arith.mulf %324, %120 : vector<3x8x1xf32>
    %326 = arith.addf %323, %325 : vector<3x8x1xf32>
    %327 = vector.broadcast %68 : f32 to vector<3x8x1xf32>
    %328 = arith.addf %326, %327 : vector<3x8x1xf32>
    %329 = arith.addf %267, %321 : vector<3x8x1xf32>
    %cst_68 = arith.constant 5.000000e-01 : f32
    %330 = vector.broadcast %cst_68 : f32 to vector<3x8x1xf32>
    %331 = arith.mulf %330, %329 : vector<3x8x1xf32>
    %332 = arith.addf %276, %328 : vector<3x8x1xf32>
    %cst_69 = arith.constant 5.000000e-01 : f32
    %333 = vector.broadcast %cst_69 : f32 to vector<3x8x1xf32>
    %334 = arith.mulf %333, %332 : vector<3x8x1xf32>
    %335 = arith.mulf %215, %215 : vector<8x1xf32>
    %336 = arith.mulf %218, %218 : vector<8x1xf32>
    %337 = arith.addf %335, %336 : vector<8x1xf32>
    %338 = math.sqrt %337 : vector<8x1xf32>
    %cst_70 = arith.constant 9.99999996E-13 : f32
    %339 = vector.broadcast %cst_70 : f32 to vector<8x1xf32>
    %340 = arith.maximumf %338, %339 : vector<8x1xf32>
    %341 = arith.mulf %331, %331 : vector<3x8x1xf32>
    %342 = arith.mulf %334, %334 : vector<3x8x1xf32>
    %343 = arith.addf %341, %342 : vector<3x8x1xf32>
    %344 = math.sqrt %343 : vector<3x8x1xf32>
    %cst_71 = arith.constant 9.99999996E-13 : f32
    %345 = vector.broadcast %cst_71 : f32 to vector<3x8x1xf32>
    %346 = arith.maximumf %344, %345 : vector<3x8x1xf32>
    %347 = arith.mulf %215, %79 : vector<8x1xf32>
    %348 = arith.mulf %218, %84 : vector<8x1xf32>
    %349 = arith.addf %347, %348 : vector<8x1xf32>
    %350 = arith.divf %349, %340 : vector<8x1xf32>
    %351 = arith.mulf %331, %89 : vector<3x8x1xf32>
    %352 = arith.mulf %334, %96 : vector<3x8x1xf32>
    %353 = arith.addf %351, %352 : vector<3x8x1xf32>
    %354 = arith.divf %353, %346 : vector<3x8x1xf32>
    %355 = vector.shape_cast %350 : vector<8x1xf32> to vector<1x8x1xf32>
    %356 = vector.broadcast %355 : vector<1x8x1xf32> to vector<3x8x1xf32>
    %357 = arith.subf %356, %354 : vector<3x8x1xf32>
    %358 = math.absf %357 : vector<3x8x1xf32>
    %cst_72 = arith.constant 0.000000e+00 : f32
    %359 = vector.broadcast %cst_72 : f32 to vector<3x8x1xf32>
    %360 = arith.subf %359, %358 : vector<3x8x1xf32>
    %361 = math.exp %360 : vector<3x8x1xf32>
    %cst_73 = arith.constant 0.000000e+00 : f32
    %362 = vector.broadcast %cst_73 : f32 to vector<3x8x1xf32>
    %363 = arith.cmpf oge, %357, %362 : vector<3x8x1xf32>
    %cst_74 = arith.constant 1.000000e+00 : f32
    %364 = vector.broadcast %cst_74 : f32 to vector<3x8x1xf32>
    %365 = arith.addf %364, %361 : vector<3x8x1xf32>
    %cst_75 = arith.constant 1.000000e+00 : f32
    %366 = vector.broadcast %cst_75 : f32 to vector<3x8x1xf32>
    %367 = arith.divf %366, %365 : vector<3x8x1xf32>
    %cst_76 = arith.constant 1.000000e+00 : f32
    %368 = vector.broadcast %cst_76 : f32 to vector<3x8x1xf32>
    %369 = arith.addf %368, %361 : vector<3x8x1xf32>
    %370 = arith.divf %361, %369 : vector<3x8x1xf32>
    %371 = arith.select %363, %367, %370 : vector<3x8x1xi1>, vector<3x8x1xf32>
    %cst_77 = arith.constant 9.99999971E-10 : f32
    %372 = vector.broadcast %cst_77 : f32 to vector<3x8x1xf32>
    %373 = arith.addf %371, %372 : vector<3x8x1xf32>
    %374 = math.log %373 : vector<3x8x1xf32>
    %375 = vector.shape_cast %79 : vector<8x1xf32> to vector<1x8x1xf32>
    %376 = vector.broadcast %375 : vector<1x8x1xf32> to vector<3x8x1xf32>
    %377 = arith.subf %376, %89 : vector<3x8x1xf32>
    %378 = math.absf %377 : vector<3x8x1xf32>
    %cst_78 = arith.constant 0.000000e+00 : f32
    %379 = vector.broadcast %cst_78 : f32 to vector<3x8x1xf32>
    %380 = arith.subf %379, %378 : vector<3x8x1xf32>
    %381 = math.exp %380 : vector<3x8x1xf32>
    %cst_79 = arith.constant 0.000000e+00 : f32
    %382 = vector.broadcast %cst_79 : f32 to vector<3x8x1xf32>
    %383 = arith.cmpf oge, %377, %382 : vector<3x8x1xf32>
    %cst_80 = arith.constant 1.000000e+00 : f32
    %384 = vector.broadcast %cst_80 : f32 to vector<3x8x1xf32>
    %385 = arith.addf %384, %381 : vector<3x8x1xf32>
    %cst_81 = arith.constant 1.000000e+00 : f32
    %386 = vector.broadcast %cst_81 : f32 to vector<3x8x1xf32>
    %387 = arith.divf %386, %385 : vector<3x8x1xf32>
    %cst_82 = arith.constant 1.000000e+00 : f32
    %388 = vector.broadcast %cst_82 : f32 to vector<3x8x1xf32>
    %389 = arith.addf %388, %381 : vector<3x8x1xf32>
    %390 = arith.divf %381, %389 : vector<3x8x1xf32>
    %391 = arith.select %383, %387, %390 : vector<3x8x1xi1>, vector<3x8x1xf32>
    %cst_83 = arith.constant 9.99999971E-10 : f32
    %392 = vector.broadcast %cst_83 : f32 to vector<3x8x1xf32>
    %393 = arith.addf %391, %392 : vector<3x8x1xf32>
    %394 = math.log %393 : vector<3x8x1xf32>
    %cst_84 = arith.constant 1.000000e-01 : f32
    %395 = vector.broadcast %cst_84 : f32 to vector<3x8x1xf32>
    %396 = arith.mulf %395, %394 : vector<3x8x1xf32>
    %397 = arith.addf %374, %396 : vector<3x8x1xf32>
    %398 = vector.shape_cast %84 : vector<8x1xf32> to vector<1x8x1xf32>
    %399 = vector.broadcast %398 : vector<1x8x1xf32> to vector<3x8x1xf32>
    %400 = arith.subf %399, %96 : vector<3x8x1xf32>
    %401 = math.absf %400 : vector<3x8x1xf32>
    %cst_85 = arith.constant 0.000000e+00 : f32
    %402 = vector.broadcast %cst_85 : f32 to vector<3x8x1xf32>
    %403 = arith.subf %402, %401 : vector<3x8x1xf32>
    %404 = math.exp %403 : vector<3x8x1xf32>
    %cst_86 = arith.constant 0.000000e+00 : f32
    %405 = vector.broadcast %cst_86 : f32 to vector<3x8x1xf32>
    %406 = arith.cmpf oge, %400, %405 : vector<3x8x1xf32>
    %cst_87 = arith.constant 1.000000e+00 : f32
    %407 = vector.broadcast %cst_87 : f32 to vector<3x8x1xf32>
    %408 = arith.addf %407, %404 : vector<3x8x1xf32>
    %cst_88 = arith.constant 1.000000e+00 : f32
    %409 = vector.broadcast %cst_88 : f32 to vector<3x8x1xf32>
    %410 = arith.divf %409, %408 : vector<3x8x1xf32>
    %cst_89 = arith.constant 1.000000e+00 : f32
    %411 = vector.broadcast %cst_89 : f32 to vector<3x8x1xf32>
    %412 = arith.addf %411, %404 : vector<3x8x1xf32>
    %413 = arith.divf %404, %412 : vector<3x8x1xf32>
    %414 = arith.select %406, %410, %413 : vector<3x8x1xi1>, vector<3x8x1xf32>
    %cst_90 = arith.constant 9.99999971E-10 : f32
    %415 = vector.broadcast %cst_90 : f32 to vector<3x8x1xf32>
    %416 = arith.addf %414, %415 : vector<3x8x1xf32>
    %417 = math.log %416 : vector<3x8x1xf32>
    %cst_91 = arith.constant 1.000000e-01 : f32
    %418 = vector.broadcast %cst_91 : f32 to vector<3x8x1xf32>
    %419 = arith.mulf %418, %417 : vector<3x8x1xf32>
    %420 = arith.addf %397, %419 : vector<3x8x1xf32>
    %421 = tpu.iota {dimensions = array<i32: 0>} : vector<8x1xi32>
    %c4_i32 = arith.constant 4 : i32
    %422 = vector.broadcast %c4_i32 : i32 to vector<8x1xi32>
    %423 = arith.cmpi slt, %421, %422 : vector<8x1xi32>
    %424 = arith.extui %423 : vector<8x1xi1> to vector<8x1xi32>
    %425 = arith.sitofp %424 : vector<8x1xi32> to vector<8x1xf32>
    %426 = vector.shape_cast %425 : vector<8x1xf32> to vector<1x8x1xf32>
    %427 = vector.broadcast %426 : vector<1x8x1xf32> to vector<3x8x1xf32>
    %428 = arith.mulf %420, %427 : vector<3x8x1xf32>
    %429 = vector.shape_cast %428 : vector<3x8x1xf32> to vector<24x1xf32>
    %430 = vector.shape_cast %429 : vector<24x1xf32> to vector<1x24x1xf32>
    %cst_92 = arith.constant dense<0.000000e+00> : vector<1xf32>
    %431 = vector.multi_reduction <add>, %430, %cst_92 [1, 2] : vector<1x24x1xf32> to vector<1xf32>
    %432 = vector.shape_cast %431 : vector<1xf32> to vector<1x1x1xf32>
    %433 = vector.extract %432[0, 0, 0] : f32 from vector<1x1x1xf32>
    %cst_93 = arith.constant 0.000000e+00 : f32
    %434 = arith.subf %cst_93, %433 : f32
    %cst_94 = arith.constant 0.0833333358 : f32
    %435 = arith.mulf %434, %cst_94 : f32
    %c0_95 = arith.constant 0 : index
    %436 = memref.load %arg5[%c0_95] : memref<1xf32, #tpu.memory_space<smem>>
    memref.store %435, %arg5[%c0_95] : memref<1xf32, #tpu.memory_space<smem>>
    return
  }
}

</mosaic_0001>

<bundles_post_ra>
// kernel: sr_rec_forward.1
= control target key start
LH: loop header
LB: loop body
LE: loop exit
PB: predicated region body
PF: predicated region fallthrough
CT: control target
= control target key end

     0   :  { %10 = vsyncpa [#allocation4], 0  ;;  %s2994_s0 = inlined_call_operand.vmem [shape: f32[16,137], index: 0, kind: input, shape index: {}]   ;;  %s2995_s1 = inlined_call_operand.vmem [shape: f32[112,32], index: 1, kind: input, shape index: {}]   ;;  %s2996_s2 = inlined_call_operand.vmem [shape: f32[201,32], index: 2, kind: input, shape index: {}]   ;;  %s2997_s3 = inlined_call_operand.vmem [shape: f32[33,129], index: 3, kind: input, shape index: {}]   ;;  %s2998_s4 = inlined_call_operand.vmem [shape: f32[2], index: 4, kind: input, shape index: {}]   ;;  %s2999_s5 = inlined_call_operand.hbm [shape: f32[1], index: 5, kind: output, shape index: {}]  }
   0x1   :  { %11 = vsyncpa [#allocation3], 0  ;;  %s26_s20 = sshll.u32 %s2998_s4, 4  ;;  %s27_s20 = int_to_ptr.vmem [resolvable:$true] %s26_s20 }
   0x2   :  { %s2320_s21 = scalar_lea.vmem %s27_s20, 16  ;;  %p2325_p1 = scmp.lt.s32.totalorder %s27_s20, %s27_s20 }
   0x3   :  { %p2321_p0 = scmp.ne.s32.totalorder %s27_s20, %s2320_s21  ;;  %p2326_p2 = scmp.lt.s32.totalorder %s2320_s21, %s2320_s21 }
   0x5   :  { %p2327_p3 = por %p2326_p2, %p2325_p1 }
   0x7   :  { %p2328_p4 = pnand %p2327_p3, %p2321_p0 }
   0x9   :  { %2331 = shalt.err (!%p2328_p4)
}
   0xa   :  { %s2346_s22 = smov [#allocation2]  }
   0xb   :  { %29 = dma.vmem_to_smem %s27_s20, 16, %s2346_s22, [#allocation4]  }
   0xc   :  { %2342 = dma.done.wait [#allocation4], 16  }
   0xd   :  { %2343 = vsyncadd [#allocation4], 4294967280 }
   0xe   :  { %33 = sfence }
   0xf   :  { %v56_v0 = vld [vmem:[%s2996_s2 + $0x40] sm:$0xff]  ;;  %v57_v1 = vld [vmem:[%s2996_s2 + $0x48] sm:$0xff]  ;;  %v58_v2 = vld [vmem:[%s2996_s2 + $0x50] sm:$0xff]  ;;  %v2347_v3 = vmov 0.0|0.0   ;;  %vm88_vm0 = vcmask 72704   ;;  %vm95_vm1 = vcmask 1040384  }
  0x10   :  { %2057 = vmatprep.subr.bf16.mxu0 %v2347_v3  ;;  %v2058_v4 = vpack.c.bf16 %v57_v1, %v56_v0  ;;  %v59_v5 = vld [vmem:[%s2996_s2 + $0x58] sm:$0xff]  ;;  %v60_v7 = vld [vmem:[%s2996_s2 + $0x60] sm:$0xff]  ;;  %v61_v8 = vld [vmem:[%s2996_s2 + $0x68] sm:$0xff]  ;;  %vm2348_vm2 = vmmov 1   ;;  %vm178_vm4 = vcmask 130048   ;;  %vm574_vm5 = vcmask 261120  }
  0x11   :  { %v2061_v6 = vpack.c.bf16 %v59_v5, %v58_v2  ;;  %v85_v9 = vld [vmem:[%s2994_s0 + $0x8] sm:$0xff]  ;;  %v2064_v10 = vpack.c.bf16 %v61_v8, %v60_v7  ;;  %v62_v11 = vld [vmem:[%s2996_s2 + $0x70] sm:$0xff]  ;;  %v63_v12 = vld [vmem:[%s2996_s2 + $0x78] sm:$0xff]  ;;  %s2350_s21 = smov 96   ;;  %s1058_s22 = sld [smem:[#allocation2]] }
  0x12   :  { %2059 = vmatpush1.bf16.msra.mxu0 %v2058_v4  ;;  %1934 = vmatprep.mubr.msk.f32.mxu0 %vm88_vm0, %v85_v9  ;;  %v2067_v13 = vpack.c.bf16 %v63_v12, %v62_v11  ;;  %v64_v14 = vld [vmem:[%s2996_s2 + $0x80] sm:$0xff]  ;;  %v65_v15 = vld [vmem:[%s2996_s2 + $0x88] sm:$0xff]  ;;  %v66_v17 = vld [vmem:[%s2996_s2 + $0x90] sm:$0xff]  ;;  %s1966_s23 = sld [smem:[#allocation2 + $0x1]]  ;;  %s2332_s28 = scalar_lea.hbm %s2999_s5, 16 }
  0x13   :  { %2060 = vmatprep.subr.bf16.mxu0 %v2347_v3  ;;  %v2070_v16 = vpack.c.bf16 %v65_v15, %v64_v14  ;;  %v67_v18 = vld [vmem:[%s2996_s2 + $0x98] sm:$0xff]  ;;  %v68_v20 = vld [vmem:[%s2996_s2 + $0xa0] sm:$0xff]  ;;  %v69_v21 = vld [vmem:[%s2996_s2 + $0xa8] sm:$0xff]  ;;  %p2333_p5 = scmp.ne.s32.totalorder %s2999_s5, %s2332_s28  ;;  %p2336_p6 = scmp.lt.u32.totalorder %s2332_s28, %s2999_s5 }
  0x14   :  { %v2073_v19 = vpack.c.bf16 %v67_v18, %v66_v17  ;;  %v2076_v22 = vpack.c.bf16 %v69_v21, %v68_v20  ;;  %v70_v23 = vld [vmem:[%s2996_s2 + $0xb0] sm:$0xff]  ;;  %v71_v24 = vld [vmem:[%s2996_s2 + $0xb8] sm:$0xff]  ;;  %v72_v26 = vld [vmem:[%s2996_s2 + $0xc0] sm:$0xff]  ;;  %v2349_v18 = vmov 0.0  }
  0x15   :  { %v2079_v25 = vpack.c.bf16 %v71_v24, %v70_v23  ;;  %v73_v27 = vld [vmem:[%s2996_s2 + $0xc8] sm:$0x1]  ;;  %vm2083_vm3 = vmpackc.low %vm95_vm1, %vm2348_vm2  ;;  %v84_v29 = vld [vmem:[%s2994_s0] sm:$0xff]  ;;  %p2338_p7 = pnand %p2336_p6, %p2333_p5 }
  0x16   :  { %2062 = vmatpush1.bf16.msra.mxu0 %v2061_v6  ;;  %v2082_v28 = vpack.c.bf16 %v73_v27, %v72_v26  ;;  %v87_v30 = vld [vmem:[%s2994_s0 + $0x18] sm:$0xff]  ;;  %v86_v31 = vld [vmem:[%s2994_s0 + $0x10] sm:$0xff]  ;;  %v34_v35 = vld [vmem:[%s2995_s1] sm:$0xff] }
  0x17   :  { %2063 = vmatprep.subr.bf16.mxu0 %v2347_v3  ;;  %v36_v32 = vld [vmem:[%s2995_s1 + $0x10] sm:$0xff]  ;;  %v37_v33 = vld [vmem:[%s2995_s1 + $0x18] sm:$0xff]  ;;  %v176_v36 = vmul.f32 0.5, %v34_v35  ;;  %2004 = vmatprep.mubr.msk.f32.mxu1 %vm178_vm4, %v34_v35  ;;  %v35_v37 = vld [vmem:[%s2995_s1 + $0x8] sm:$0xff] }
  0x18   :  { %v2085_v34 = vpack.c.bf16 %v37_v33, %v36_v32  ;;  %v177_v45 = vmul.f32 0.5, %v35_v37  ;;  %v48_v55 = vld [vmem:[%s2996_s2] sm:$0xff]  ;;  %v49_v56 = vld [vmem:[%s2996_s2 + $0x8] sm:$0xff]  ;;  %v50_v61 = vld [vmem:[%s2996_s2 + $0x10] sm:$0xff] }
  0x19   :  { %v2105_v60 = vpack.c.bf16 %v49_v56, %v48_v55  ;;  %v51_v62 = vld [vmem:[%s2996_s2 + $0x18] sm:$0xff]  ;;  %v52_v0 = vld [vmem:[%s2996_s2 + $0x20] sm:$0xff]  ;;  %v53_v1 = vld [vmem:[%s2996_s2 + $0x28] sm:$0xff] }
  0x1a   :  { %2065 = vmatpush1.bf16.msra.mxu0 %v2064_v10  ;;  %2086 = vmatprep.subr.bf16.mxu1 %v2085_v34  ;;  %v2109_v63 = vpack.c.bf16 %v51_v62, %v50_v61  ;;  %v2113_v2 = vpack.c.bf16 %v53_v1, %v52_v0  ;;  %v55_v4 = vld [vmem:[%s2996_s2 + $0x38] sm:$0xff]  ;;  %v75_v6 = vld [vmem:[%s2997_s3 + $0x8] sm:$0xff]  ;;  %v74_v9 = vld [vmem:[%s2997_s3] sm:$0xff] }
  0x1b   :  { %2066 = vmatprep.subr.bf16.mxu0 %v2347_v3  ;;  %2088 = vmatpush3.bf16.msra.mxu1 %v2085_v34  ;;  %v77_v7 = vld [vmem:[%s2997_s3 + $0x18] sm:$0xff]  ;;  %v76_v10 = vld [vmem:[%s2997_s3 + $0x10] sm:$0xff]  ;;  %v79_v12 = vld [vmem:[%s2997_s3 + $0x28] sm:$0xff] }
  0x1c   :  { %v2121_v8 = vpack.c.bf16 %v77_v7, %v75_v6  ;;  %v2123_v11 = vpack.c.bf16 %v76_v10, %v74_v9  ;;  %v78_v15 = vld [vmem:[%s2997_s3 + $0x20] sm:$0xff] }
  0x1e   :  { %2068 = vmatpush1.bf16.msra.mxu0 %v2067_v13  ;;  %2005 = vmatmul.mubr.msk.f32.vlgmr.msra.gmra.mrb[0].mxu1 %vm178_vm4, %v35_v37  ;;  %v81_v13 = vld [vmem:[%s2997_s3 + $0x38] sm:$0xff] }
  0x1f   :  { %2069 = vmatprep.subr.bf16.mxu0 %v2347_v3  ;;  %2011 = vmatprep.mubr.msk.f32.mxu1 %vm178_vm4, %v176_v36  ;;  %v2125_v14 = vpack.c.bf16 %v81_v13, %v79_v12 }
  0x22   :  { %2071 = vmatpush1.bf16.msra.mxu0 %v2070_v16  ;;  %v80_v16 = vld [vmem:[%s2997_s3 + $0x30] sm:$0xff] }
  0x23   :  { %2072 = vmatprep.subr.bf16.mxu0 %v2347_v3  ;;  %v2127_v17 = vpack.c.bf16 %v80_v16, %v78_v15 }
  0x26   :  { %2074 = vmatpush1.bf16.msra.mxu0 %v2073_v19 }
  0x27   :  { %2075 = vmatprep.subr.bf16.mxu0 %v2347_v3 }
  0x2a   :  { %2077 = vmatpush1.bf16.msra.mxu0 %v2076_v22 }
  0x2b   :  { %2078 = vmatprep.subr.bf16.mxu0 %v2347_v3 }
  0x2e   :  { %2080 = vmatpush1.bf16.msra.mxu0 %v2079_v25 }
  0x2f   :  { %2081 = vmatprep.subr.bf16.mxu0 %v2347_v3  ;;  %v54_v3 = vld [vmem:[%s2996_s2 + $0x30] sm:$0xff] }
  0x30   :  { %v2117_v5 = vpack.c.bf16 %v55_v4, %v54_v3 }
  0x32   :  { %2084 = vmatpush1.bf16.msk.msra.mxu0 %vm2083_vm3, %v2082_v28 }
  0x33   :  { %2122 = vmatprep.subr.bf16.mxu0 %v2121_v8 }
  0x35   :  { %164 = vmatmul.mubr.f32.vlgmr.msra.gmra.mrb[0].mxu0 %v84_v29 }
  0x36   :  { %1935 = vmatprep.mubr.msk.f32.mxu0 %vm88_vm0, %v87_v30  ;;  %2124 = vmatpush1.bf16.msra.mxu0 %v2123_v11 }
  0x37   :  { %2126 = vmatprep.subr.bf16.mxu0 %v2125_v14 }
  0x39   :  { %169 = vmatmul.mubr.f32.gmra.mrb[2].mxu0 %v86_v31 }
  0x3a   :  { %2128 = vmatpush1.bf16.msra.mxu0 %v2127_v17  ;;  %878 = vmatprep.mubr.f32.mxu0 %v2349_v18 }
  0xf1   :  { %v2006_v46 = vpop.f32.mrb[0].mxu1 }
  0xf2   :  { %v251_v47 = vpop.f32.mrb[1].mxu1  ;;  %v261_v52 = vsub.f32 0.0, %v2006_v46 }
  0xf3   :  { %v260_v51 = vsub.f32 0.0, %v251_v47 }
 0x108   :  { %v165_v38 = vpop.f32.mrb[0].mxu0 }
 0x109   :  { %v167_v39 = vpop.f32.mrb[1].mxu0  ;;  %v174_v41 = vmax.f32 %v165_v38, 0.0 }
 0x10c   :  { %v170_v40 = vpop.f32.mrb[2].mxu0 }
 0x10d   :  { %v175_v42 = vmax.f32 %v170_v40, 0.0  ;;  %v172_v43 = vpop.f32.mrb[3].mxu0 }
 0x10f   :  { %v2089_v44 = vpack.c.bf16 %v175_v42, %v174_v41 }
 0x111   :  { %2090 = vmatprep.subr.bf16.mxu1 %v2089_v44 }
 0x112   :  { %2092 = vmatpush3.bf16.msra.mxu1 %v2089_v44 }
 0x115   :  { %2012 = vmatmul.mubr.msk.f32.vlgmr.msra.gmra.mrb[2].mxu1 %vm178_vm4, %v177_v45 }
 0x116   :  { %2018 = vmatprep.mubr.msk.f32.mxu1 %vm178_vm4, %v176_v36 }
 0x1e8   :  { %v2013_v48 = vpop.f32.mrb[2].mxu1 }
 0x1e9   :  { %v334_v49 = vpop.f32.mrb[3].mxu1 }
 0x1ea   :  { %v2093_v50 = vpack.c.bf16 %v2013_v48, %v334_v49 }
 0x1ec   :  { %2094 = vmatprep.subr.bf16.mxu1 %v2093_v50 }
 0x1ed   :  { %2096 = vmatpush3.bf16.msra.mxu1 %v2093_v50 }
 0x1ee   :  { %2098 = vmatprep.subr.bf16.mxu1 %v2089_v44 }
 0x1f0   :  { %2019 = vmatmul.mubr.msk.f32.vlgmr.msra.gmra.mrb[4].mxu1 %vm178_vm4, %v177_v45 }
 0x1f1   :  { %2100 = vmatpush3.bf16.msra.mxu1 %v2089_v44  ;;  %2025 = vmatprep.mubr.msk.f32.mxu1 %vm178_vm4, %v260_v51 }
 0x1f4   :  { %2026 = vmatmul.mubr.msk.f32.vlgmr.msra.gmra.mrb[6].mxu1 %vm178_vm4, %v261_v52 }
 0x1f5   :  { %2032 = vmatprep.mubr.msk.f32.mxu1 %vm178_vm4, %v260_v51 }
 0x2c3   :  { %v2020_v53 = vpop.f32.mrb[4].mxu1 }
 0x2c4   :  { %v409_v54 = vpop.f32.mrb[5].mxu1 }
 0x2c7   :  { %v2027_v57 = vpop.f32.mrb[6].mxu1 }
 0x2c8   :  { %v490_v58 = vpop.f32.mrb[7].mxu1 }
 0x2c9   :  { %v2101_v59 = vpack.c.bf16 %v2027_v57, %v490_v58 }
 0x2cb   :  { %2102 = vmatprep.subr.bf16.mxu1 %v2101_v59 }
 0x2cc   :  { %2104 = vmatpush3.bf16.msra.mxu1 %v2101_v59 }
 0x2cd   :  { %2106 = vmatprep.subr.bf16.mxu1 %v2105_v60 }
 0x2cf   :  { %2033 = vmatmul.mubr.msk.f32.vlgmr.msra.gmra.mrb[8].mxu1 %vm178_vm4, %v261_v52 }
 0x2d0   :  { %2108 = vmatpush3.bf16.msra.mxu1 %v2105_v60  ;;  %2043 = vmatprep.mubr.msk.f32.mxu1 %vm574_vm5, %v409_v54 }
 0x2d1   :  { %2110 = vmatprep.subr.bf16.mxu1 %v2109_v63 }
 0x2d4   :  { %2112 = vmatpush3.bf16.msra.mxu1 %v2109_v63 }
 0x2d5   :  { %2114 = vmatprep.subr.bf16.mxu1 %v2113_v2 }
 0x2d7   :  { %2044 = vmatmul.mubr.msk.f32.vlgmr.msra.gmra.mrb[10].mxu1 %vm574_vm5, %v2020_v53 }
 0x2d8   :  { %2116 = vmatpush3.bf16.msra.mxu1 %v2113_v2 }
 0x2d9   :  { %2118 = vmatprep.subr.bf16.mxu1 %v2117_v5 }
 0x2dc   :  { %2120 = vmatpush3.bf16.msra.mxu1 %v2117_v5 }
 0x3a2   :  { %v2034_v19 = vpop.f32.mrb[8].mxu1 }
 0x3a3   :  { %v565_v20 = vpop.f32.mrb[9].mxu1 }
 0x3a4   :  { %2054 = vmatprep.mubr.msk.f32.mxu1 %vm574_vm5, %v565_v20  ;;  %v1950_v20 = vld [vmem:[%s2997_s3 + $0x40] ss:$0 sm:$0xff] }
 0x3a5   :  { %2055 = vmatmul.mubr.msk.f32.vlgmr.msra.gmra.mrb[12].mxu1 %vm574_vm5, %v2034_v19 }
 0x3a6   :  { %1015 = vmatprep.mubr.f32.mxu1 %v2349_v18 }
 0x3aa   :  { %v2045_v21 = vpop.f32.mrb[10].mxu1 }
 0x3ab   :  { %v738_v22 = vsel %vm574_vm5, %v2045_v21, 0.0  ;;  %v647_v23 = vpop.f32.mrb[11].mxu1 }
 0x3ac   :  { %v737_v24 = vsel %vm574_vm5, %v647_v23, 0.0 }
 0x3ad   :  { %v739_v25 = vadd.f32 %v738_v22, %v737_v24 }
 0x3af   :  { %v740_v26 = vrot.slane %v739_v25, 4 }
 0x3b1   :  { %v741_v27 = vadd.f32 %v740_v26, %v739_v25 }
 0x3b3   :  { %v742_v28 = vrot.slane %v741_v27, 2 }
 0x3b5   :  { %v743_v29 = vadd.f32 %v742_v28, %v741_v27 }
 0x3b7   :  { %v744_v30 = vrot.slane %v743_v29, 1 }
 0x3b9   :  { %v745_v31 = vadd.f32 %v744_v30, %v743_v29 }
 0x3bb   :  { %v747_v32 = vmul.f32 0.0625, %v745_v31 }
 0x3bd   :  { %v748_v33 = vsub.f32 %v647_v23, %v747_v32  ;;  %v749_v34 = vsub.f32 %v2045_v21, %v747_v32  ;;  %v1951_v21 = vld [vmem:[%s2997_s3 + $0x48] ss:$0 sm:$0xff] }
 0x3bf   :  { %v750_v35 = vmul.f32 %v748_v33, %v748_v33  ;;  %v751_v36 = vmul.f32 %v749_v34, %v749_v34 }
 0x3c1   :  { %v752_v37 = vsel %vm574_vm5, %v750_v35, 0.0  ;;  %v753_v38 = vsel %vm574_vm5, %v751_v36, 0.0 }
 0x3c2   :  { %v754_v39 = vadd.f32 %v753_v38, %v752_v37 }
 0x3c4   :  { %v755_v40 = vrot.slane %v754_v39, 4 }
 0x3c6   :  { %v756_v41 = vadd.f32 %v755_v40, %v754_v39  ;;  %v38_v40 = vld [vmem:[%s2995_s1 + $0x20] sm:$0xff] }
 0x3c8   :  { %v757_v42 = vrot.slane %v756_v41, 2 }
 0x3ca   :  { %v758_v43 = vadd.f32 %v757_v42, %v756_v41  ;;  %v41_v41 = vld [vmem:[%s2995_s1 + $0x38] sm:$0xff]  ;;  %v39_v42 = vld [vmem:[%s2995_s1 + $0x28] sm:$0xff] }
 0x3cc   :  { %v759_v44 = vrot.slane %v758_v43, 1 }
 0x3ce   :  { %v760_v45 = vadd.f32 %v759_v44, %v758_v43  ;;  %v42_v43 = vld [vmem:[%s2995_s1 + $0x40] sm:$0xff]  ;;  %v40_v44 = vld [vmem:[%s2995_s1 + $0x30] sm:$0xff] }
 0x3d0   :  { %v761_v46 = vmul.f32 0.0625, %v760_v45  ;;  %v43_v45 = vld [vmem:[%s2995_s1 + $0x48] sm:$0xff] }
 0x3d2   :  { %v762_v47 = vadd.f32 1e-05, %v761_v46  ;;  %v44_v46 = vld [vmem:[%s2995_s1 + $0x50] sm:$0xff] }
 0x3d4   :  { %2150 = vrsqrt.f32 %v762_v47  ;;  %v45_v47 = vld [vmem:[%s2995_s1 + $0x58] sm:$0xff] }
 0x3de   :  { %v2151_v48 = vpop.eup %2150 }
 0x3df   :  { %v764_v49 = vmul.f32 %v2151_v48, %v748_v33  ;;  %v765_v50 = vmul.f32 %v2151_v48, %v749_v34  ;;  %v46_v48 = vld [vmem:[%s2995_s1 + $0x60] sm:$0xff] }
 0x3e1   :  { %1952 = vmatmul.mubr.msk.f32.vlgmr.msra.gmra.mrb[4].mxu0 %vm574_vm5, %v764_v49  ;;  %v47_v49 = vld [vmem:[%s2995_s1 + $0x68] sm:$0xff]  ;;  %s2351_s1 = smov 32  }
 0x3e2   :  { %884 = vmatprep.mubr.f32.mxu0 %v2349_v18 }
 0x3e5   :  { %1953 = vmatmul.mubr.msk.f32.gmra.mrb[6].mxu0 %vm574_vm5, %v765_v50 }
 0x3e6   :  { %890 = vmatprep.mubr.f32.mxu0 %v2349_v18 }
 0x478   :  { %v2056_v51 = vpop.f32.mrb[12].mxu1 }
 0x479   :  { %v767_v52 = vsel %vm574_vm5, %v2056_v51, 0.0  ;;  %v728_v53 = vpop.f32.mrb[13].mxu1 }
 0x47a   :  { %v766_v54 = vsel %vm574_vm5, %v728_v53, 0.0 }
 0x47b   :  { %v768_v55 = vadd.f32 %v767_v52, %v766_v54 }
 0x47d   :  { %v769_v56 = vrot.slane %v768_v55, 4 }
 0x47f   :  { %v770_v57 = vadd.f32 %v769_v56, %v768_v55 }
 0x481   :  { %v771_v58 = vrot.slane %v770_v57, 2 }
 0x483   :  { %v772_v59 = vadd.f32 %v771_v58, %v770_v57 }
 0x485   :  { %v773_v60 = vrot.slane %v772_v59, 1 }
 0x487   :  { %v774_v61 = vadd.f32 %v773_v60, %v772_v59 }
 0x489   :  { %v775_v62 = vmul.f32 0.0625, %v774_v61 }
 0x48b   :  { %v776_v63 = vsub.f32 %v728_v53, %v775_v62  ;;  %v777_v0 = vsub.f32 %v2056_v51, %v775_v62 }
 0x48d   :  { %v778_v1 = vmul.f32 %v776_v63, %v776_v63  ;;  %v779_v2 = vmul.f32 %v777_v0, %v777_v0 }
 0x48f   :  { %v780_v3 = vsel %vm574_vm5, %v778_v1, 0.0  ;;  %v781_v4 = vsel %vm574_vm5, %v779_v2, 0.0 }
 0x490   :  { %v782_v5 = vadd.f32 %v781_v4, %v780_v3 }
 0x492   :  { %v783_v6 = vrot.slane %v782_v5, 4 }
 0x494   :  { %v784_v7 = vadd.f32 %v783_v6, %v782_v5 }
 0x496   :  { %v785_v8 = vrot.slane %v784_v7, 2 }
 0x498   :  { %v786_v9 = vadd.f32 %v785_v8, %v784_v7 }
 0x49a   :  { %v787_v10 = vrot.slane %v786_v9, 1 }
 0x49c   :  { %v788_v11 = vadd.f32 %v787_v10, %v786_v9 }
 0x49e   :  { %v789_v12 = vmul.f32 0.0625, %v788_v11 }
 0x4a0   :  { %v790_v13 = vadd.f32 1e-05, %v789_v12 }
 0x4a2   :  { %2152 = vrsqrt.f32 %v790_v13 }
 0x4ac   :  { %v2153_v14 = vpop.eup %2152 }
 0x4ad   :  { %v792_v15 = vmul.f32 %v2153_v14, %v776_v63  ;;  %v793_v16 = vmul.f32 %v2153_v14, %v777_v0 }
 0x4af   :  { %1954 = vmatmul.mubr.msk.f32.gmra.mrb[8].mxu0 %vm574_vm5, %v792_v15 }
 0x4b0   :  { %896 = vmatprep.mubr.f32.mxu0 %v2349_v18 }
 0x4b3   :  { %1955 = vmatmul.mubr.msk.f32.gmra.mrb[10].mxu0 %vm574_vm5, %v793_v16 }
 0x4b4   :  { %v880_v17 = vpop.f32.mrb[4].mxu0  ;;  %997 = vmatprep.mubr.f32.mxu0 %v2349_v18 }
 0x4b5   :  { %v882_v19 = vpop.f32.mrb[5].mxu0  ;;  %v881_v23 = vadd.f32 %v1950_v20, %v880_v17 }
 0x4b6   :  { %v883_v26 = vadd.f32 %v1951_v21, %v882_v19 }
 0x4b8   :  { %v886_v22 = vpop.f32.mrb[6].mxu0 }
 0x4b9   :  { %v887_v24 = vadd.f32 %v1950_v20, %v886_v22  ;;  %v888_v25 = vpop.f32.mrb[7].mxu0 }
 0x4ba   :  { %v889_v27 = vadd.f32 %v1951_v21, %v888_v25 }
 0x4bb   :  { %v2131_v28 = vpack.c.bf16 %v887_v24, %v881_v23 }
 0x4bc   :  { %v2129_v29 = vpack.c.bf16 %v889_v27, %v883_v26 }
 0x4be   :  { %2130 = vmatprep.subr.bf16.mxu0 %v2129_v29  ;;  %2137 = vmatprep.subr.bf16.mxu1 %v2129_v29 }
 0x4bf   :  { %2132 = vmatpush1.bf16.msra.mxu0 %v2131_v28  ;;  %2139 = vmatpush1.bf16.msra.mxu1 %v2131_v28 }
 0x582   :  { %v892_v30 = vpop.f32.mrb[8].mxu0 }
 0x583   :  { %v894_v31 = vpop.f32.mrb[9].mxu0  ;;  %v893_v33 = vadd.f32 %v1950_v20, %v892_v30 }
 0x584   :  { %v895_v36 = vadd.f32 %v1951_v21, %v894_v31 }
 0x586   :  { %v898_v32 = vpop.f32.mrb[10].mxu0 }
 0x587   :  { %v899_v34 = vadd.f32 %v1950_v20, %v898_v32  ;;  %v900_v35 = vpop.f32.mrb[11].mxu0 }
 0x588   :  { %v901_v37 = vadd.f32 %v1951_v21, %v900_v35 }
 0x589   :  { %v2135_v38 = vpack.c.bf16 %v899_v34, %v893_v33 }
 0x58a   :  { %v2133_v39 = vpack.c.bf16 %v901_v37, %v895_v36 }
 0x58c   :  { %2134 = vmatprep.subr.bf16.mxu0 %v2133_v39  ;;  %2138 = vmatprep.subr.bf16.mxu1 %v2133_v39 }
 0x58d   :  { %2136 = vmatpush1.bf16.msra.mxu0 %v2135_v38  ;;  %2140 = vmatpush1.bf16.msra.mxu1 %v2135_v38 }
 0x590   :  { %1956 = vmatmul.mubr.msk.f32.vlgmr.msra.gmra.mrb[12].mxu0 %vm574_vm5, %v38_v40  ;;  %1959 = vmatmul.mubr.msk.f32.vlgmr.msra.gmra.mrb[14].mxu1 %vm574_vm5, %v41_v41 }
 0x591   :  { %1003 = vmatprep.mubr.f32.mxu0 %v2349_v18  ;;  %1021 = vmatprep.mubr.f32.mxu1 %v2349_v18 }
 0x594   :  { %1957 = vmatmul.mubr.msk.f32.gmra.mrb[14].mxu0 %vm574_vm5, %v39_v42  ;;  %1960 = vmatmul.mubr.msk.f32.gmra.mrb[16].mxu1 %vm574_vm5, %v42_v43 }
 0x595   :  { %1009 = vmatprep.mubr.f32.mxu0 %v2349_v18  ;;  %1027 = vmatprep.mubr.f32.mxu1 %v2349_v18 }
 0x598   :  { %1958 = vmatmul.mubr.msk.f32.gmra.mrb[16].mxu0 %vm574_vm5, %v40_v44  ;;  %1961 = vmatmul.mubr.msk.f32.gmra.mrb[18].mxu1 %vm574_vm5, %v43_v45 }
 0x599   :  { %1033 = vmatprep.mubr.f32.mxu1 %v2349_v18 }
 0x59c   :  { %1962 = vmatmul.mubr.msk.f32.gmra.mrb[20].mxu1 %vm574_vm5, %v44_v46 }
 0x59d   :  { %1039 = vmatprep.mubr.f32.mxu1 %v2349_v18 }
 0x5a0   :  { %1963 = vmatmul.mubr.msk.f32.gmra.mrb[22].mxu1 %vm574_vm5, %v45_v47 }
 0x5a1   :  { %1045 = vmatprep.mubr.f32.mxu1 %v2349_v18 }
 0x5a4   :  { %1964 = vmatmul.mubr.msk.f32.gmra.mrb[24].mxu1 %vm574_vm5, %v46_v48 }
 0x5a5   :  { %1051 = vmatprep.mubr.f32.mxu1 %v2349_v18 }
 0x5a8   :  { %1965 = vmatmul.mubr.msk.f32.gmra.mrb[26].mxu1 %vm574_vm5, %v47_v49 }
 0x663   :  { %v2600_v50 = vpop.f32.mrb[14].mxu1  ;;  %v2602_v51 = vpop.f32.mrb[12].mxu0 }
 0x664   :  { %1065 = vrot.lane.b32.xlu0 %v2600_v50, %s2350_s21  ;;  %v2606_v52 = vpop.f32.mrb[15].mxu1  ;;  %v2608_v53 = vpop.f32.mrb[13].mxu0 }
 0x667   :  { %v2610_v54 = vpop.f32.mrb[16].mxu1  ;;  %v2612_v55 = vpop.f32.mrb[14].mxu0 }
 0x668   :  { %1130 = vrot.lane.b32.xlu0 %v2602_v51, %s2350_s21  ;;  %v2616_v56 = vpop.f32.mrb[15].mxu0  ;;  %v2618_v57 = vpop.f32.mrb[17].mxu1  ;;  %v1078_v58 = vmul.f32 %v2610_v54, %v2602_v51 }
 0x66a   :  { %v1081_v12 = vsel %vm574_vm5, %v1078_v58, 0.0 }
 0x66b   :  { %v1011_v59 = vpop.f32.mrb[16].mxu0  ;;  %v2622_v60 = vpop.f32.mrb[18].mxu1 }
 0x66c   :  { %1143 = vrot.lane.b32.xlu0 %v2612_v55, %s2350_s21  ;;  %v2626_v61 = vpop.f32.mrb[19].mxu1  ;;  %v1079_v62 = vmul.f32 %v2622_v60, %v2602_v51  ;;  %v2630_v63 = vpop.f32.mrb[17].mxu0  ;;  %v1060_v0 = vmul.f32 %v1011_v59, %v2602_v51 }
 0x66e   :  { %v1084_v1 = vsel %vm574_vm5, %v1079_v62, 0.0  ;;  %v1061_v13 = vsel %vm574_vm5, %v1060_v0, 0.0 }
 0x66f   :  { %v2634_v2 = vpop.f32.mrb[20].mxu1  ;;  %1085 = vadd.xlane.f32.xlu1 %v1084_v1 }
 0x670   :  { %1477 = vrot.lane.b32.xlu0 %v2610_v54, %s2350_s21  ;;  %v1080_v3 = vmul.f32 %v2634_v2, %v2602_v51  ;;  %v2640_v4 = vpop.f32.mrb[21].mxu1 }
 0x672   :  { %v1087_v5 = vsel %vm574_vm5, %v1080_v3, 0.0 }
 0x673   :  { %1088 = vadd.xlane.f32.xlu1 %v1087_v5  ;;  %v1041_v6 = vpop.f32.mrb[22].mxu1 }
 0x674   :  { %v2643_v7 = vpop.f32.mrb[23].mxu1 }
 0x677   :  { %v1047_v8 = vpop.f32.mrb[24].mxu1 }
 0x678   :  { %v2645_v9 = vpop.f32.mrb[25].mxu1 }
 0x67b   :  { %v1053_v10 = vpop.f32.mrb[26].mxu1 }
 0x67c   :  { %v2648_v11 = vpop.f32.mrb[27].mxu1 }
 0x684   :  { %1093 = vrot.lane.b32.xlu1 %v1041_v6, %s2350_s21 }
 0x688   :  { %1097 = vrot.lane.b32.xlu1 %v1053_v10, %s2350_s21 }
 0x68f   :  { %1082 = vadd.xlane.f32.xlu0 %v1081_v12 }
 0x6a5   :  { %1205 = vrot.lane.b32.xlu0 %v1011_v59, %s2350_s21 }
 0x6a9   :  { %1479 = vrot.lane.b32.xlu0 %v2622_v60, %s2350_s21 }
 0x6c8   :  { %1062 = vadd.xlane.f32.xlu0 %v1061_v13 }
 0x6d6   :  { %v1066_v14 = vpop.permute.xlu0 %1065 }
 0x6d7   :  { %v1068_v15 = vmul.f32 %v1066_v14, %v2612_v55  ;;  %v1217_v20 = vmul.f32 %v1066_v14, %v2602_v51 }
 0x6d9   :  { %1070 = vrot.lane.b32.xlu1 %v1068_v15, %s2351_s1 }
 0x6da   :  { %v1131_v16 = vpop.permute.xlu0 %1130 }
 0x6db   :  { %v1133_v17 = vmul.f32 %v1131_v16, %v1011_v59  ;;  %v1155_v19 = vmul.f32 %v1131_v16, %v2600_v50  ;;  %v1330_v21 = vmul.f32 %v1131_v16, %v1041_v6  ;;  %v1276_v22 = vmul.f32 %v1131_v16, %v2610_v54 }
 0x6dc   :  { %v1278_v23 = vmul.f32 %v1131_v16, %v2634_v2  ;;  %v1277_v24 = vmul.f32 %v1131_v16, %v2622_v60  ;;  %v1332_v26 = vmul.f32 %v1131_v16, %v1053_v10  ;;  %v1331_v27 = vmul.f32 %v1131_v16, %v1047_v8 }
 0x6dd   :  { %1135 = vrot.lane.b32.xlu1 %v1133_v17, %s2350_s21 }
 0x6de   :  { %1481 = vrot.lane.b32.xlu0 %v2634_v2, %s2350_s21  ;;  %v1144_v25 = vpop.permute.xlu0 %1143 }
 0x6df   :  { %v1357_v28 = vmul.f32 %v1144_v25, %v1041_v6  ;;  %v1146_v30 = vmul.f32 %v1144_v25, %v1011_v59  ;;  %v1164_v32 = vmul.f32 %v1144_v25, %v2600_v50  ;;  %v1303_v34 = vmul.f32 %v1144_v25, %v2610_v54 }
 0x6e0   :  { %v1304_v35 = vmul.f32 %v1144_v25, %v2622_v60  ;;  %v1358_v36 = vmul.f32 %v1144_v25, %v1047_v8  ;;  %v1305_v37 = vmul.f32 %v1144_v25, %v2634_v2  ;;  %v1359_v38 = vmul.f32 %v1144_v25, %v1053_v10 }
 0x6e1   :  { %1157 = vrot.lane.b32.xlu1 %v1155_v19, %s2350_s21 }
 0x6e2   :  { %1095 = vrot.lane.b32.xlu0 %v1047_v8, %s2350_s21  ;;  %v1478_v29 = vpop.permute.xlu0 %1477 }
 0x6e3   :  { %v1486_v31 = vmul.f32 %v1478_v29, %v2602_v51  ;;  %v1540_v33 = vmul.f32 %v1478_v29, %v2612_v55 }
 0x6e5   :  { %1235 = vrot.lane.b32.xlu1 %v1068_v15, %s2350_s21 }
 0x6e6   :  { %1219 = vrot.lane.b32.xlu0 %v1217_v20, %s2350_s21 }
 0x6e9   :  { %1336 = vrot.lane.b32.xlu1 %v1330_v21, %s2350_s21 }
 0x6ea   :  { %1282 = vrot.lane.b32.xlu0 %v1276_v22, %s2350_s21 }
 0x6ed   :  { %1286 = vrot.lane.b32.xlu1 %v1278_v23, %s2350_s21 }
 0x6ee   :  { %1284 = vrot.lane.b32.xlu0 %v1277_v24, %s2350_s21 }
 0x6f1   :  { %1340 = vrot.lane.b32.xlu1 %v1332_v26, %s2350_s21 }
 0x6f2   :  { %1338 = vrot.lane.b32.xlu0 %v1331_v27, %s2350_s21 }
 0x6f5   :  { %1363 = vrot.lane.b32.xlu1 %v1357_v28, %s2350_s21 }
 0x6f6   :  { %1148 = vrot.lane.b32.xlu0 %v1146_v30, %s2350_s21 }
 0x6f9   :  { %1492 = vrot.lane.b32.xlu1 %v1486_v31, %s2350_s21 }
 0x6fa   :  { %1166 = vrot.lane.b32.xlu0 %v1164_v32, %s2350_s21 }
 0x6fc   :  { %v2702_v46 = vpop.xlane.xlu1 %1085 }
 0x6fd   :  { %1546 = vrot.lane.b32.xlu1 %v1540_v33, %s2350_s21 }
 0x6fe   :  { %1309 = vrot.lane.b32.xlu0 %v1303_v34, %s2350_s21 }
 0x700   :  { %v2706_v48 = vpop.xlane.xlu1 %1088 }
 0x702   :  { %1311 = vrot.lane.b32.xlu0 %v1304_v35, %s2350_s21 }
 0x704   :  { %v1094_v54 = vpop.permute.xlu1 %1093 }
 0x705   :  { %v1102_v62 = vmul.f32 %v1094_v54, %v2612_v55  ;;  %v1513_v2 = vmul.f32 %v1094_v54, %v2602_v51 }
 0x706   :  { %1365 = vrot.lane.b32.xlu0 %v1358_v36, %s2350_s21 }
 0x708   :  { %v1098_v1 = vpop.permute.xlu1 %1097 }
 0x709   :  { %v1515_v3 = vmul.f32 %v1098_v1, %v2602_v51  ;;  %v1104_v5 = vmul.f32 %v1098_v1, %v2612_v55 }
 0x70a   :  { %1313 = vrot.lane.b32.xlu0 %v1305_v37, %s2350_s21 }
 0x70e   :  { %1367 = vrot.lane.b32.xlu0 %v1359_v38, %s2350_s21 }
 0x71c   :  { %v2692_v39 = vpop.xlane.xlu0 %1082 }
 0x720   :  { %v1206_v40 = vpop.permute.xlu0 %1205 }
 0x721   :  { %v1208_v41 = vmul.f32 %v1206_v40, %v2602_v51  ;;  %v1226_v42 = vmul.f32 %v1206_v40, %v2612_v55 }
 0x723   :  { %1210 = vrot.lane.b32.xlu0 %v1208_v41, %s2350_s21 }
 0x724   :  { %v1480_v43 = vpop.permute.xlu0 %1479 }
 0x725   :  { %v1487_v44 = vmul.f32 %v1480_v43, %v2602_v51  ;;  %v1541_v45 = vmul.f32 %v1480_v43, %v2612_v55 }
 0x727   :  { %1228 = vrot.lane.b32.xlu0 %v1226_v42, %s2350_s21 }
 0x72b   :  { %1494 = vrot.lane.b32.xlu0 %v1487_v44, %s2350_s21 }
 0x72f   :  { %1548 = vrot.lane.b32.xlu0 %v1541_v45, %s2350_s21 }
 0x74b   :  { %v1071_v8 = vpop.permute.xlu1 %1070 }
 0x74c   :  { %v1073_v27 = vsel %vm574_vm5, %v1071_v8, 0.0 }
 0x74f   :  { %v1136_v12 = vpop.permute.xlu1 %1135 }
 0x750   :  { %v1138_v29 = vsel %vm574_vm5, %v1136_v12, 0.0 }
 0x755   :  { %v2704_v47 = vpop.xlane.xlu0 %1062 }
 0x759   :  { %v1482_v49 = vpop.permute.xlu0 %1481 }
 0x75a   :  { %v1488_v50 = vmul.f32 %v1482_v49, %v2602_v51  ;;  %v1542_v59 = vmul.f32 %v1482_v49, %v2612_v55 }
 0x75c   :  { %1496 = vrot.lane.b32.xlu1 %v1488_v50, %s2350_s21 }
 0x75d   :  { %v1096_v58 = vpop.permute.xlu0 %1095 }
 0x75e   :  { %v1514_v60 = vmul.f32 %v1096_v58, %v2602_v51  ;;  %v1103_v0 = vmul.f32 %v1096_v58, %v2612_v55  ;;  %v1158_v51 = vpop.permute.xlu1 %1157 }
 0x75f   :  { %v1160_v33 = vsel %vm574_vm5, %v1158_v51, 0.0 }
 0x760   :  { %1550 = vrot.lane.b32.xlu1 %v1542_v59, %s2350_s21  ;;  %1521 = vrot.lane.b32.xlu0 %v1514_v60, %s2350_s21 }
 0x761   :  { %v1220_v6 = vpop.permute.xlu0 %1219 }
 0x762   :  { %v1236_v15 = vpop.permute.xlu1 %1235  ;;  %v1222_v17 = vsel %vm574_vm5, %v1220_v6, 0.0 }
 0x763   :  { %v1238_v36 = vsel %vm574_vm5, %v1236_v15, 0.0 }
 0x764   :  { %1108 = vrot.lane.b32.xlu1 %v1102_v62, %s2351_s1  ;;  %1569 = vrot.lane.b32.xlu0 %v1103_v0, %s2350_s21 }
 0x765   :  { %v1283_v10 = vpop.permute.xlu0 %1282 }
 0x766   :  { %v1337_v55 = vpop.permute.xlu1 %1336  ;;  %v1291_v20 = vsel %vm574_vm5, %v1283_v10, 0.0 }
 0x767   :  { %v1345_v23 = vsel %vm574_vm5, %v1337_v55, 0.0 }
 0x768   :  { %1519 = vrot.lane.b32.xlu1 %v1513_v2, %s2350_s21  ;;  %1523 = vrot.lane.b32.xlu0 %v1515_v3, %s2350_s21 }
 0x769   :  { %v1285_v13 = vpop.permute.xlu0 %1284 }
 0x76a   :  { %v1287_v21 = vpop.permute.xlu1 %1286  ;;  %v1294_v40 = vsel %vm574_vm5, %v1285_v13, 0.0 }
 0x76b   :  { %v1297_v24 = vsel %vm574_vm5, %v1287_v21, 0.0 }
 0x76c   :  { %1567 = vrot.lane.b32.xlu1 %v1102_v62, %s2350_s21  ;;  %1571 = vrot.lane.b32.xlu0 %v1104_v5, %s2350_s21 }
 0x76d   :  { %v1339_v14 = vpop.permute.xlu0 %1338 }
 0x76e   :  { %v1341_v25 = vpop.permute.xlu1 %1340  ;;  %v1348_v44 = vsel %vm574_vm5, %v1339_v14, 0.0 }
 0x76f   :  { %v1351_v28 = vsel %vm574_vm5, %v1341_v25, 0.0 }
 0x770   :  { %1110 = vrot.lane.b32.xlu1 %v1103_v0, %s2351_s1 }
 0x771   :  { %v1149_v16 = vpop.permute.xlu0 %1148 }
 0x772   :  { %v1151_v31 = vsel %vm574_vm5, %v1149_v16, 0.0  ;;  %v1364_v32 = vpop.permute.xlu1 %1363 }
 0x773   :  { %v1372_v38 = vsel %vm574_vm5, %v1364_v32, 0.0 }
 0x774   :  { %1112 = vrot.lane.b32.xlu1 %v1104_v5, %s2351_s1 }
 0x775   :  { %v1167_v19 = vpop.permute.xlu0 %1166 }
 0x776   :  { %v1493_v37 = vpop.permute.xlu1 %1492  ;;  %v1169_v50 = vsel %vm574_vm5, %v1167_v19, 0.0 }
 0x777   :  { %v1501_v42 = vsel %vm574_vm5, %v1493_v37, 0.0 }
 0x779   :  { %v1310_v22 = vpop.permute.xlu0 %1309 }
 0x77a   :  { %v1318_v34 = vsel %vm574_vm5, %v1310_v22, 0.0  ;;  %v1547_v43 = vpop.permute.xlu1 %1546 }
 0x77b   :  { %v1555_v49 = vsel %vm574_vm5, %v1547_v43, 0.0 }
 0x77d   :  { %v1312_v26 = vpop.permute.xlu0 %1311 }
 0x77e   :  { %v1321_v59 = vsel %vm574_vm5, %v1312_v26, 0.0 }
 0x781   :  { %v1366_v30 = vpop.permute.xlu0 %1365 }
 0x782   :  { %v1375_v62 = vsel %vm574_vm5, %v1366_v30, 0.0 }
 0x785   :  { %v1314_v35 = vpop.permute.xlu0 %1313 }
 0x786   :  { %v1324_v0 = vsel %vm574_vm5, %v1314_v35, 0.0 }
 0x789   :  { %v1368_v41 = vpop.permute.xlu0 %1367 }
 0x78a   :  { %v1378_v2 = vsel %vm574_vm5, %v1368_v41, 0.0 }
 0x78b   :  { %1223 = vadd.xlane.f32.xlu0 %v1222_v17 }
 0x78f   :  { %1292 = vadd.xlane.f32.xlu0 %v1291_v20 }
 0x793   :  { %1346 = vadd.xlane.f32.xlu0 %v1345_v23 }
 0x795   :  { %v1211_v45 = vpop.permute.xlu0 %1210 }
 0x796   :  { %v1213_v54 = vsel %vm574_vm5, %v1211_v45, 0.0 }
 0x797   :  { %1298 = vadd.xlane.f32.xlu0 %v1297_v24 }
 0x798   :  { %1074 = vadd.xlane.f32.xlu1 %v1073_v27 }
 0x799   :  { %v1229_v58 = vpop.permute.xlu0 %1228 }
 0x79a   :  { %v1231_v60 = vsel %vm574_vm5, %v1229_v58, 0.0 }
 0x79b   :  { %1352 = vadd.xlane.f32.xlu0 %v1351_v28 }
 0x79c   :  { %1139 = vadd.xlane.f32.xlu1 %v1138_v29 }
 0x79d   :  { %v1495_v1 = vpop.permute.xlu0 %1494 }
 0x79e   :  { %v1504_v3 = vsel %vm574_vm5, %v1495_v1, 0.0 }
 0x79f   :  { %1152 = vadd.xlane.f32.xlu0 %v1151_v31 }
 0x7a0   :  { %1161 = vadd.xlane.f32.xlu1 %v1160_v33 }
 0x7a1   :  { %v1549_v5 = vpop.permute.xlu0 %1548 }
 0x7a2   :  { %v1558_v6 = vsel %vm574_vm5, %v1549_v5, 0.0 }
 0x7a3   :  { %1319 = vadd.xlane.f32.xlu0 %v1318_v34 }
 0x7a4   :  { %1239 = vadd.xlane.f32.xlu1 %v1238_v36 }
 0x7a7   :  { %1373 = vadd.xlane.f32.xlu0 %v1372_v38 }
 0x7a8   :  { %1295 = vadd.xlane.f32.xlu1 %v1294_v40 }
 0x7ab   :  { %1502 = vadd.xlane.f32.xlu0 %v1501_v42 }
 0x7ac   :  { %1349 = vadd.xlane.f32.xlu1 %v1348_v44 }
 0x7af   :  { %1556 = vadd.xlane.f32.xlu0 %v1555_v49 }
 0x7b0   :  { %1170 = vadd.xlane.f32.xlu1 %v1169_v50 }
 0x7b3   :  { %1214 = vadd.xlane.f32.xlu0 %v1213_v54 }
 0x7b4   :  { %1322 = vadd.xlane.f32.xlu1 %v1321_v59 }
 0x7b7   :  { %1232 = vadd.xlane.f32.xlu0 %v1231_v60 }
 0x7b8   :  { %1376 = vadd.xlane.f32.xlu1 %v1375_v62 }
 0x7bc   :  { %1325 = vadd.xlane.f32.xlu1 %v1324_v0 }
 0x7c0   :  { %1379 = vadd.xlane.f32.xlu1 %v1378_v2 }
 0x7c4   :  { %1505 = vadd.xlane.f32.xlu1 %v1504_v3 }
 0x7c8   :  { %1559 = vadd.xlane.f32.xlu1 %v1558_v6 }
 0x7ce   :  { %v1497_v8 = vpop.permute.xlu1 %1496 }
 0x7cf   :  { %v1507_v10 = vsel %vm574_vm5, %v1497_v8, 0.0 }
 0x7d0   :  { %1508 = vadd.xlane.f32.xlu0 %v1507_v10 }
 0x7d2   :  { %v1551_v12 = vpop.permute.xlu1 %1550  ;;  %v1522_v16 = vpop.permute.xlu0 %1521 }
 0x7d3   :  { %v1531_v24 = vsel %vm574_vm5, %v1522_v16, 0.0  ;;  %v1561_v26 = vsel %vm574_vm5, %v1551_v12, 0.0 }
 0x7d6   :  { %v1109_v13 = vpop.permute.xlu1 %1108  ;;  %v1570_v21 = vpop.permute.xlu0 %1569 }
 0x7d7   :  { %v1117_v51 = vsel %vm574_vm5, %v1109_v13, 0.0  ;;  %v1579_v27 = vsel %vm574_vm5, %v1570_v21, 0.0 }
 0x7d8   :  { %1118 = vadd.xlane.f32.xlu0 %v1117_v51 }
 0x7da   :  { %v1520_v14 = vpop.permute.xlu1 %1519  ;;  %v1524_v25 = vpop.permute.xlu0 %1523 }
 0x7db   :  { %v1528_v15 = vsel %vm574_vm5, %v1520_v14, 0.0  ;;  %v1534_v28 = vsel %vm574_vm5, %v1524_v25, 0.0 }
 0x7dc   :  { %1529 = vadd.xlane.f32.xlu0 %v1528_v15 }
 0x7de   :  { %v1568_v17 = vpop.permute.xlu1 %1567  ;;  %v1572_v29 = vpop.permute.xlu0 %1571 }
 0x7df   :  { %v1576_v55 = vsel %vm574_vm5, %v1568_v17, 0.0  ;;  %v1582_v30 = vsel %vm574_vm5, %v1572_v29, 0.0 }
 0x7e0   :  { %1577 = vadd.xlane.f32.xlu0 %v1576_v55 }
 0x7e2   :  { %v1111_v19 = vpop.permute.xlu1 %1110 }
 0x7e3   :  { %v1120_v20 = vsel %vm574_vm5, %v1111_v19, 0.0 }
 0x7e4   :  { %1121 = vadd.xlane.f32.xlu1 %v1120_v20 }
 0x7e6   :  { %v1113_v22 = vpop.permute.xlu1 %1112 }
 0x7e7   :  { %v1123_v23 = vsel %vm574_vm5, %v1113_v22, 0.0 }
 0x7e8   :  { %1124 = vadd.xlane.f32.xlu0 %v1123_v23  ;;  %1532 = vadd.xlane.f32.xlu1 %v1531_v24 }
 0x7ec   :  { %1562 = vadd.xlane.f32.xlu0 %v1561_v26  ;;  %1580 = vadd.xlane.f32.xlu1 %v1579_v27 }
 0x7f0   :  { %1535 = vadd.xlane.f32.xlu1 %v1534_v28 }
 0x7f4   :  { %1583 = vadd.xlane.f32.xlu1 %v1582_v30 }
 0x818   :  { %v1224_v31 = vpop.xlane.xlu0 %1223 }
 0x819   :  { %v1225_v60 = vmul.f32 0.17677669, %v1224_v31 }
 0x81c   :  { %v1293_v32 = vpop.xlane.xlu0 %1292 }
 0x81d   :  { %v1300_v35 = vmul.f32 0.17677669, %v1293_v32 }
 0x820   :  { %v1347_v33 = vpop.xlane.xlu0 %1346 }
 0x821   :  { %v1354_v34 = vmul.f32 0.17677669, %v1347_v33 }
 0x823   :  { %v1384_v38 = vmax.f32 %v1300_v35, %v1354_v34 }
 0x824   :  { %v1299_v36 = vpop.xlane.xlu0 %1298 }
 0x825   :  { %v2763_v37 = vpop.xlane.xlu1 %1074  ;;  %v1387_v42 = vsub.f32 %v1300_v35, %v1384_v38  ;;  %v1396_v43 = vsub.f32 %v1354_v34, %v1384_v38  ;;  %v1302_v5 = vmul.f32 0.17677669, %v1299_v36 }
 0x827   :  { %v1390_v49 = vmul.f32 1.442695, %v1387_v42  ;;  %v1399_v50 = vmul.f32 1.442695, %v1396_v43 }
 0x828   :  { %v1353_v40 = vpop.xlane.xlu0 %1352 }
 0x829   :  { %v1140_v41 = vpop.xlane.xlu1 %1139  ;;  %2154 = vpow2.f32 %v1390_v49  ;;  %v2765_v0 = vmul.f32 0.17677669, %v1353_v40 }
 0x82a   :  { %2156 = vpow2.f32 %v1399_v50  ;;  %v1141_v1 = vmul.f32 0.17677669, %v1140_v41 }
 0x82b   :  { %v1386_v14 = vmax.f32 %v1302_v5, %v2765_v0 }
 0x82c   :  { %v1153_v44 = vpop.xlane.xlu0 %1152 }
 0x82d   :  { %v1162_v45 = vpop.xlane.xlu1 %1161  ;;  %v1389_v26 = vsub.f32 %v1302_v5, %v1386_v14  ;;  %v1154_v33 = vmul.f32 0.17677669, %v1153_v44 }
 0x82e   :  { %v1163_v58 = vmul.f32 0.17677669, %v1162_v45 }
 0x82f   :  { %v1394_v41 = vmul.f32 1.442695, %v1389_v26 }
 0x830   :  { %v1320_v54 = vpop.xlane.xlu0 %1319  ;;  %v1173_v6 = vmax.f32 %v1141_v1, %v1163_v58 }
 0x831   :  { %v1240_v59 = vpop.xlane.xlu1 %1239  ;;  %v1327_v8 = vmul.f32 0.17677669, %v1320_v54 }
 0x832   :  { %v1241_v62 = vmul.f32 0.17677669, %v1240_v59  ;;  %v1174_v19 = vsub.f32 %v1141_v1, %v1173_v6  ;;  %v1177_v23 = vsub.f32 %v1163_v58, %v1173_v6 }
 0x833   :  { %v2770_v29 = vpop.eup %2154 }
 0x834   :  { %v1250_v2 = vmax.f32 %v1225_v60, %v1241_v62  ;;  %v1374_v3 = vpop.xlane.xlu0 %1373  ;;  %v2774_v32 = vpop.eup %2156  ;;  %v1175_v34 = vmul.f32 1.442695, %v1174_v19  ;;  %v1178_v36 = vmul.f32 1.442695, %v1177_v23 }
 0x835   :  { %v1381_v10 = vmul.f32 0.17677669, %v1374_v3  ;;  %v1296_v12 = vpop.xlane.xlu1 %1295  ;;  %v1405_v43 = vadd.f32 %v2774_v32, %v2770_v29 }
 0x836   :  { %v1251_v13 = vsub.f32 %v1225_v60, %v1250_v2  ;;  %v1254_v51 = vsub.f32 %v1241_v62, %v1250_v2  ;;  %v1301_v24 = vmul.f32 0.17677669, %v1296_v12  ;;  %v1398_v60 = vsub.f32 %v2765_v0, %v1386_v14 }
 0x837   :  { %v1408_v15 = vmax.f32 %v1327_v8, %v1381_v10 }
 0x838   :  { %v1252_v16 = vmul.f32 1.442695, %v1251_v13  ;;  %v1255_v17 = vmul.f32 1.442695, %v1254_v51  ;;  %v2768_v55 = vpop.xlane.xlu0 %1502  ;;  %v1403_v19 = vmul.f32 1.442695, %v1398_v60 }
 0x839   :  { %v1411_v20 = vsub.f32 %v1327_v8, %v1408_v15  ;;  %v1420_v21 = vsub.f32 %v1381_v10, %v1408_v15  ;;  %v1350_v22 = vpop.xlane.xlu1 %1349 }
 0x83a   :  { %2158 = vpow2.f32 %v1252_v16  ;;  %v1355_v25 = vmul.f32 0.17677669, %v1350_v22 }
 0x83b   :  { %2160 = vpow2.f32 %v1255_v17  ;;  %v1414_v27 = vmul.f32 1.442695, %v1411_v20  ;;  %v1423_v28 = vmul.f32 1.442695, %v1420_v21 }
 0x83c   :  { %v1385_v30 = vmax.f32 %v1301_v24, %v1355_v25  ;;  %v2772_v31 = vpop.xlane.xlu0 %1556 }
 0x83d   :  { %2162 = vpow2.f32 %v1414_v27  ;;  %v1171_v35 = vpop.xlane.xlu1 %1170 }
 0x83e   :  { %2164 = vpow2.f32 %v1423_v28  ;;  %v1388_v38 = vsub.f32 %v1301_v24, %v1385_v30  ;;  %v1172_v40 = vmul.f32 0.17677669, %v1171_v35  ;;  %v1397_v42 = vsub.f32 %v1355_v25, %v1385_v30 }
 0x83f   :  { %2166 = vpow2.f32 %v1175_v34 }
 0x840   :  { %v1181_v45 = vmax.f32 %v1154_v33, %v1172_v40  ;;  %v1215_v49 = vpop.xlane.xlu0 %1214  ;;  %v1392_v50 = vmul.f32 1.442695, %v1388_v38  ;;  %2168 = vpow2.f32 %v1178_v36  ;;  %v1401_v44 = vmul.f32 1.442695, %v1397_v42 }
 0x841   :  { %v1323_v54 = vpop.xlane.xlu1 %1322  ;;  %2170 = vpow2.f32 %v1394_v41  ;;  %v1216_v5 = vmul.f32 0.17677669, %v1215_v49 }
 0x842   :  { %v1182_v58 = vsub.f32 %v1154_v33, %v1181_v45  ;;  %2172 = vrcp.f32 %v1405_v43  ;;  %v1185_v62 = vsub.f32 %v1172_v40, %v1181_v45  ;;  %v1328_v13 = vmul.f32 0.17677669, %v1323_v54 }
 0x843   :  { %2174 = vpow2.f32 %v1392_v50 }
 0x844   :  { %v2159_v59 = vpop.eup %2158  ;;  %v1233_v1 = vpop.xlane.xlu0 %1232  ;;  %v1183_v3 = vmul.f32 1.442695, %v1182_v58  ;;  %v1186_v12 = vmul.f32 1.442695, %v1185_v62  ;;  %2176 = vpow2.f32 %v1401_v44 }
 0x845   :  { %v2161_v2 = vpop.eup %2160  ;;  %v1234_v6 = vmul.f32 0.17677669, %v1233_v1  ;;  %v1377_v8 = vpop.xlane.xlu1 %1376 }
 0x846   :  { %v1257_v10 = vadd.f32 %v2161_v2, %v2159_v59  ;;  %v1382_v51 = vmul.f32 0.17677669, %v1377_v8 }
 0x847   :  { %v2163_v15 = vpop.eup %2162  ;;  %v1242_v16 = vmax.f32 %v1216_v5, %v1234_v6 }
 0x848   :  { %v2165_v17 = vpop.eup %2164  ;;  %2178 = vrcp.f32 %v1257_v10  ;;  %v1409_v20 = vmax.f32 %v1328_v13, %v1382_v51 }
 0x849   :  { %v1429_v0 = vadd.f32 %v2165_v17, %v2163_v15  ;;  %2180 = vpow2.f32 %v1183_v3  ;;  %v1243_v14 = vsub.f32 %v1216_v5, %v1242_v16  ;;  %v1246_v21 = vsub.f32 %v1234_v6, %v1242_v16  ;;  %v1326_v22 = vpop.xlane.xlu1 %1325  ;;  %v2779_v24 = vpop.eup %2166 }
 0x84a   :  { %2182 = vpow2.f32 %v1186_v12  ;;  %v1412_v23 = vsub.f32 %v1328_v13, %v1409_v20  ;;  %v1421_v27 = vsub.f32 %v1382_v51, %v1409_v20  ;;  %v2781_v28 = vpop.eup %2168  ;;  %v1329_v38 = vmul.f32 0.17677669, %v1326_v22 }
 0x84b   :  { %2184 = vrcp.f32 %v1429_v0  ;;  %v1244_v25 = vmul.f32 1.442695, %v1243_v14  ;;  %v1247_v26 = vmul.f32 1.442695, %v1246_v21  ;;  %v2783_v33 = vpop.eup %2170  ;;  %v1180_v42 = vadd.f32 %v2781_v28, %v2779_v24 }
 0x84c   :  { %2186 = vpow2.f32 %v1403_v19  ;;  %v1416_v30 = vmul.f32 1.442695, %v1412_v23  ;;  %v1425_v34 = vmul.f32 1.442695, %v1421_v27  ;;  %v2173_v36 = vpop.eup %2172 }
 0x84d   :  { %2188 = vpow2.f32 %v1244_v25  ;;  %v1380_v35 = vpop.xlane.xlu1 %1379  ;;  %v2785_v41 = vpop.eup %2174  ;;  %v1433_v50 = vmul.f32 %v2173_v36, %v2770_v29  ;;  %v1456_v3 = vmul.f32 %v2173_v36, %v2774_v32  ;;  %v1564_v25 = vmul.f32 0.17677669, %v2772_v31 }
 0x84e   :  { %2190 = vpow2.f32 %v1247_v26  ;;  %v1383_v40 = vmul.f32 0.17677669, %v1380_v35  ;;  %v2789_v45 = vpop.eup %2176 }
 0x84f   :  { %2192 = vpow2.f32 %v1416_v30  ;;  %v1438_v32 = vmul.f32 %v1433_v50, %v2608_v53  ;;  %v1459_v20 = vmul.f32 %v1456_v3, %v2608_v53  ;;  %v1510_v30 = vmul.f32 0.17677669, %v2768_v55 }
 0x850   :  { %v1410_v43 = vmax.f32 %v1329_v38, %v1383_v40  ;;  %2194 = vpow2.f32 %v1425_v34 }
 0x851   :  { %2196 = vrcp.f32 %v1180_v42  ;;  %v1588_v34 = vmax.f32 %v1510_v30, %v1564_v25 }
 0x852   :  { %v2179_v49 = vpop.eup %2178  ;;  %v1413_v54 = vsub.f32 %v1329_v38, %v1410_v43  ;;  %v1422_v62 = vsub.f32 %v1383_v40, %v1410_v43  ;;  %v1506_v40 = vpop.xlane.xlu1 %1505 }
 0x853   :  { %v2181_v58 = vpop.eup %2180  ;;  %v1262_v44 = vmul.f32 %v2179_v49, %v2159_v59  ;;  %v1268_v60 = vmul.f32 %v2179_v49, %v2161_v2  ;;  %v1406_v59 = vadd.f32 %v2789_v45, %v2785_v41  ;;  %v1600_v55 = vsub.f32 %v1564_v25, %v1588_v34 }
 0x854   :  { %v2183_v1 = vpop.eup %2182  ;;  %v1418_v5 = vmul.f32 1.442695, %v1413_v54  ;;  %v1427_v13 = vmul.f32 1.442695, %v1422_v62  ;;  %v2823_v54 = vstv %s1058_s22 }
 0x855   :  { %v2185_v6 = vpop.eup %2184  ;;  %v2794_v8 = vmul.f32 %v1262_v44, %v2606_v52  ;;  %v2797_v10 = vmul.f32 %v1268_v60, %v2606_v52  ;;  %v1188_v12 = vadd.f32 %v2183_v1, %v2181_v58  ;;  %v1591_v44 = vsub.f32 %v1510_v30, %v1588_v34 }
 0x856   :  { %v2799_v29 = vpop.eup %2186  ;;  %v1442_v51 = vmul.f32 %v2185_v6, %v2163_v15  ;;  %v1462_v16 = vmul.f32 %v2185_v6, %v2165_v17  ;;  %2198 = vpow2.f32 %v1418_v5 }
 0x857   :  { %v2189_v2 = vpop.eup %2188  ;;  %2200 = vrcp.f32 %v1188_v12  ;;  %v1407_v15 = vadd.f32 %v2799_v29, %v2783_v33  ;;  %v2831_v12 = vstv %s1966_s23  ;;  %v1594_v25 = vmul.f32 1.442695, %v1591_v44 }
 0x858   :  { %v2191_v19 = vpop.eup %2190  ;;  %v1447_v52 = vmul.f32 %v1442_v51, %v2616_v56  ;;  %v1465_v0 = vmul.f32 %v1462_v16, %v2616_v56  ;;  %2202 = vpow2.f32 %v1427_v13 }
 0x859   :  { %v2193_v14 = vpop.eup %2192  ;;  %v1249_v17 = vadd.f32 %v2191_v19, %v2189_v2  ;;  %2204 = vrcp.f32 %v1406_v59  ;;  %v1560_v59 = vpop.xlane.xlu1 %1559 }
 0x85a   :  { %v2809_v21 = vadd.f32 %v1447_v52, %v1438_v32  ;;  %v2811_v22 = vadd.f32 %v1465_v0, %v1459_v20  ;;  %v2195_v23 = vpop.eup %2194  ;;  %v2835_v20 = vadd.f32 %v2823_v54, %v2763_v37  ;;  %v1565_v34 = vmul.f32 0.17677669, %v1560_v59 }
 0x85b   :  { %2206 = vrcp.f32 %v1249_v17  ;;  %v1430_v26 = vadd.f32 %v2195_v23, %v2193_v14  ;;  %v2197_v27 = vpop.eup %2196 }
 0x85c   :  { %2208 = vrcp.f32 %v1407_v15  ;;  %v1190_v36 = vmul.f32 %v2197_v27, %v2779_v24  ;;  %v1198_v38 = vmul.f32 %v2197_v27, %v2781_v28 }
 0x85d   :  { %2210 = vrcp.f32 %v1430_v26  ;;  %v2819_v43 = vpop.xlane.xlu0 %1508  ;;  %v1603_v26 = vmul.f32 1.442695, %v1600_v55 }
 0x85e   :  { %v1191_v24 = vmul.f32 %v1190_v36, %v2608_v53  ;;  %v1199_v28 = vmul.f32 %v1198_v38, %v2608_v53 }
 0x860   :  { %v2815_v35 = vpop.eup %2198 }
 0x861   :  { %v2201_v42 = vpop.eup %2200 }
 0x862   :  { %v2821_v31 = vpop.eup %2202  ;;  %v1193_v49 = vmul.f32 %v2201_v42, %v2181_v58  ;;  %v1200_v50 = vmul.f32 %v2201_v42, %v2183_v1  ;;  %v1511_v42 = vmul.f32 0.17677669, %v1506_v40 }
 0x863   :  { %v1431_v60 = vadd.f32 %v2821_v31, %v2815_v35  ;;  %v2205_v62 = vpop.eup %2204 }
 0x864   :  { %v1194_v3 = vmul.f32 %v1193_v49, %v2616_v56  ;;  %v1201_v5 = vmul.f32 %v1200_v50, %v2616_v56  ;;  %v1435_v52 = vmul.f32 %v2205_v62, %v2785_v41  ;;  %v1457_v0 = vmul.f32 %v2205_v62, %v2789_v45 }
 0x865   :  { %v2207_v6 = vpop.eup %2206  ;;  %2212 = vrcp.f32 %v1431_v60  ;;  %v1119_v58 = vpop.xlane.xlu0 %1118  ;;  %v1589_v60 = vmax.f32 %v1511_v42, %v1565_v34 }
 0x866   :  { %v1195_v1 = vadd.f32 %v1194_v3, %v1191_v24  ;;  %v1202_v13 = vadd.f32 %v1201_v5, %v1199_v28  ;;  %v1259_v51 = vmul.f32 %v2207_v6, %v2189_v2  ;;  %v1266_v16 = vmul.f32 %v2207_v6, %v2191_v19  ;;  %v2209_v32 = vpop.eup %2208 }
 0x867   :  { %v2840_v15 = vadd.f32 %v1119_v58, %v2823_v54  ;;  %v2211_v17 = vpop.eup %2210  ;;  %v1437_v45 = vmul.f32 %v2209_v32, %v2783_v33  ;;  %v1439_v49 = vmul.f32 %v1435_v52, %v2608_v53  ;;  %v1460_v50 = vmul.f32 %v1457_v0, %v2608_v53 }
 0x868   :  { %v1260_v27 = vmul.f32 %v1259_v51, %v2630_v63  ;;  %v1267_v2 = vmul.f32 %v1266_v16, %v2630_v63  ;;  %v1444_v19 = vmul.f32 %v2211_v17, %v2193_v14  ;;  %v1463_v30 = vmul.f32 %v2211_v17, %v2195_v23 }
 0x869   :  { %v2846_v37 = vsub.f32 %v2835_v20, %v2840_v15  ;;  %v1530_v41 = vpop.xlane.xlu0 %1529  ;;  %v1197_v23 = vadd.f32 %v2831_v12, %v1195_v1  ;;  %v1203_v44 = vadd.f32 %v1202_v13, %v2831_v12  ;;  %2214 = vpow2.f32 %v1594_v25 }
 0x86a   :  { %v1264_v36 = vadd.f32 %v2794_v8, %v1260_v27  ;;  %v1270_v38 = vadd.f32 %v2797_v10, %v1267_v2  ;;  %v1448_v63 = vmul.f32 %v1444_v19, %v2616_v56  ;;  %v1466_v14 = vmul.f32 %v1463_v30, %v2616_v56 }
 0x86b   :  { %v1458_v8 = vmul.f32 %v2209_v32, %v2799_v29  ;;  %2216 = vpow2.f32 %v1603_v26  ;;  %v1537_v6 = vmul.f32 0.17677669, %v1530_v41  ;;  %v1440_v29 = vmul.f32 %v1437_v45, %v2608_v53 }
 0x86c   :  { %v1265_v55 = vadd.f32 %v1264_v36, %v2831_v12  ;;  %v1271_v33 = vadd.f32 %v1270_v38, %v2831_v12  ;;  %v2860_v10 = vadd.f32 %v1448_v63, %v1439_v49  ;;  %v2862_v40 = vadd.f32 %v1466_v14, %v1460_v50 }
 0x86d   :  { %v1578_v62 = vpop.xlane.xlu0 %1577  ;;  %v1461_v16 = vmul.f32 %v1458_v8, %v2608_v53  ;;  %v1592_v59 = vsub.f32 %v1511_v42, %v1589_v60  ;;  %v1601_v53 = vsub.f32 %v1565_v34, %v1589_v60  ;;  %v1512_v8 = vmul.f32 0.17677669, %v2819_v43 }
 0x86e   :  { %v1272_v24 = vadd.f32 %v1265_v55, %v1197_v23  ;;  %v1274_v28 = vadd.f32 %v1271_v33, %v1203_v44  ;;  %v1585_v3 = vmul.f32 0.17677669, %v1578_v62  ;;  %vm1859_vm15 = vcmp.ge.f32.partialorder %v2846_v37, 0.0 }
 0x86f   :  { %v2213_v5 = vpop.eup %2212  ;;  %v1605_v34 = vmul.f32 1.442695, %v1601_v53 }
 0x870   :  { %v1273_v58 = vmul.f32 0.5, %v1272_v24  ;;  %v1275_v1 = vmul.f32 0.5, %v1274_v28  ;;  %v1446_v13 = vmul.f32 %v2213_v5, %v2815_v35  ;;  %v1464_v51 = vmul.f32 %v2213_v5, %v2821_v31 }
 0x871   :  { %v1612_v32 = vmax.f32 %v1537_v6, %v1585_v3  ;;  %v1122_v52 = vpop.xlane.xlu1 %1121 }
 0x872   :  { %v1690_v0 = vmul.f32 %v1273_v58, %v1273_v58  ;;  %v1691_v17 = vmul.f32 %v1275_v1, %v1275_v1  ;;  %v1735_v25 = vmul.f32 %v1275_v1, %v2835_v20  ;;  %v1449_v26 = vmul.f32 %v1446_v13, %v2616_v56 }
 0x873   :  { %v1467_v27 = vmul.f32 %v1464_v51, %v2616_v56  ;;  %v1615_v2 = vsub.f32 %v1537_v6, %v1612_v32  ;;  %v1624_v19 = vsub.f32 %v1585_v3, %v1612_v32  ;;  %v2872_v35 = vadd.f32 %v1122_v52, %v2823_v54  ;;  %v2215_v14 = vpop.eup %2214 }
 0x874   :  { %v1692_v31 = vadd.f32 %v1691_v17, %v1690_v0  ;;  %v2874_v30 = vadd.f32 %v1449_v26, %v1440_v29  ;;  %v1596_v56 = vmul.f32 1.442695, %v1592_v59  ;;  %v1734_v63 = vmul.f32 %v1273_v58, %v2704_v47 }
 0x875   :  { %v2876_v41 = vadd.f32 %v1467_v27, %v1461_v16  ;;  %v1618_v45 = vmul.f32 1.442695, %v1615_v2  ;;  %v1627_v36 = vmul.f32 1.442695, %v1624_v19  ;;  %v2880_v38 = vsub.f32 %v2835_v20, %v2872_v35  ;;  %v1533_v42 = vpop.xlane.xlu1 %1532  ;;  %v1125_v49 = vpop.xlane.xlu0 %1124 }
 0x876   :  { %2218 = vrsqrt.f32 %v1692_v31  ;;  %v2883_v50 = vadd.f32 %v1125_v49, %v2823_v54  ;;  %v2217_v44 = vpop.eup %2216  ;;  %v1538_v60 = vmul.f32 0.17677669, %v1533_v42  ;;  %v2891_v24 = vadd.f32 %v1735_v25, %v1734_v63 }
 0x877   :  { %2220 = vpow2.f32 %v1618_v45  ;;  %v1609_v28 = vadd.f32 %v2217_v44, %v2215_v14  ;;  %vm1695_vm6 = vcmp.eq.f32.partialorder %v1692_v31, inf  ;;  %vm1697_vm7 = vcmp.eq.f32.partialorder %v1692_v31, 0.0 }
 0x878   :  { %2222 = vpow2.f32 %v1627_v36  ;;  %v2888_v23 = vsub.f32 %v2835_v20, %v2883_v50  ;;  %v1698_v52 = vand.u32 2147483648, %v1692_v31  ;;  %vm1860_vm2 = vcmp.ge.f32.partialorder %v2880_v38, 0.0 }
 0x879   :  { %v1581_v55 = vpop.xlane.xlu1 %1580  ;;  %v1563_v33 = vpop.xlane.xlu0 %1562  ;;  %2224 = vpow2.f32 %v1596_v56 }
 0x87a   :  { %v1586_v62 = vmul.f32 0.17677669, %v1581_v55  ;;  %v1566_v54 = vmul.f32 0.17677669, %v1563_v33  ;;  %2226 = vpow2.f32 %v1605_v34  ;;  %vm1861_vm4 = vcmp.ge.f32.partialorder %v2888_v23, 0.0 }
 0x87b   :  { %2228 = vrcp.f32 %v1609_v28 }
 0x87c   :  { %v1613_v3 = vmax.f32 %v1538_v60, %v1586_v62  ;;  %v1590_v5 = vmax.f32 %v1512_v8, %v1566_v54 }
 0x87d   :  { %v1536_v6 = vpop.xlane.xlu1 %1535 }
 0x87e   :  { %v1616_v58 = vsub.f32 %v1538_v60, %v1613_v3  ;;  %v1625_v1 = vsub.f32 %v1586_v62, %v1613_v3  ;;  %v1593_v20 = vsub.f32 %v1512_v8, %v1590_v5  ;;  %v1602_v13 = vsub.f32 %v1566_v54, %v1590_v5 }
 0x87f   :  { %v1539_v25 = vmul.f32 0.17677669, %v1536_v6 }
 0x880   :  { %v2219_v51 = vpop.eup %2218  ;;  %v1620_v43 = vmul.f32 1.442695, %v1616_v58  ;;  %v1629_v16 = vmul.f32 1.442695, %v1625_v1  ;;  %v1598_v17 = vmul.f32 1.442695, %v1593_v20 }
 0x881   :  { %v2221_v29 = vpop.eup %2220  ;;  %v1584_v59 = vpop.xlane.xlu1 %1583  ;;  %v1694_v32 = vmul.f32 %v2219_v51, %v1692_v31  ;;  %v1607_v2 = vmul.f32 1.442695, %v1602_v13 }
 0x882   :  { %v2223_v0 = vpop.eup %2222  ;;  %v1587_v26 = vmul.f32 0.17677669, %v1584_v59  ;;  %2230 = vpow2.f32 %v1620_v43 }
 0x883   :  { %v1633_v27 = vadd.f32 %v2223_v0, %v2221_v29  ;;  %v1696_v19 = vsel %vm1695_vm6, %v1692_v31, %v1694_v32  ;;  %v2225_v53 = vpop.eup %2224  ;;  %2232 = vpow2.f32 %v1629_v16 }
 0x884   :  { %v1614_v45 = vmax.f32 %v1539_v25, %v1587_v26  ;;  %v1699_v36 = vsel %vm1697_vm7, %v1698_v52, %v1696_v19  ;;  %v2227_v49 = vpop.eup %2226 }
 0x885   :  { %2234 = vrcp.f32 %v1633_v27  ;;  %v1700_v42 = vmax.f32 %v1699_v36, 1e-12  ;;  %v1610_v33 = vadd.f32 %v2227_v49, %v2225_v53  ;;  %v2229_v8 = vpop.eup %2228 }
 0x886   :  { %2236 = vpow2.f32 %v1598_v17  ;;  %v1617_v56 = vsub.f32 %v1539_v25, %v1614_v45  ;;  %v1626_v63 = vsub.f32 %v1587_v26, %v1614_v45  ;;  %v1637_v62 = vmul.f32 %v2229_v8, %v2215_v14 }
 0x887   :  { %2238 = vpow2.f32 %v1607_v2  ;;  %v1660_v31 = vmul.f32 %v2229_v8, %v2217_v44  ;;  %v1471_v17 = vadd.f32 %v2811_v22, %v2831_v12 }
 0x888   :  { %v1622_v34 = vmul.f32 1.442695, %v1617_v56  ;;  %v1631_v55 = vmul.f32 1.442695, %v1626_v63  ;;  %2240 = vrcp.f32 %v1700_v42  ;;  %v1642_v20 = vmul.f32 %v1637_v62, %v2618_v57 }
 0x889   :  { %v1663_v51 = vmul.f32 %v1660_v31, %v2618_v57 }
 0x88a   :  { %2242 = vpow2.f32 %v1622_v34 }
 0x88b   :  { %2244 = vpow2.f32 %v1631_v55 }
 0x88c   :  { %v2231_v60 = vpop.eup %2230  ;;  %2246 = vrcp.f32 %v1610_v33 }
 0x88d   :  { %v2233_v54 = vpop.eup %2232 }
 0x88e   :  { %v1634_v3 = vadd.f32 %v2233_v54, %v2231_v60 }
 0x88f   :  { %v2235_v28 = vpop.eup %2234 }
 0x890   :  { %v2237_v5 = vpop.eup %2236  ;;  %v1646_v6 = vmul.f32 %v2235_v28, %v2221_v29  ;;  %v1666_v58 = vmul.f32 %v2235_v28, %v2223_v0  ;;  %2248 = vrcp.f32 %v1634_v3  ;;  %v1453_v0 = vadd.f32 %v2809_v21, %v2831_v12 }
 0x891   :  { %v2239_v1 = vpop.eup %2238 }
 0x892   :  { %v2241_v13 = vpop.eup %2240  ;;  %v1651_v43 = vmul.f32 %v1646_v6, %v2643_v7  ;;  %v1669_v16 = vmul.f32 %v1666_v58, %v2643_v7  ;;  %v1611_v14 = vadd.f32 %v2239_v1, %v2237_v5 }
 0x893   :  { %v2899_v59 = vmul.f32 %v2241_v13, %v2891_v24  ;;  %v2920_v13 = vsub.f32 %v2704_v47, %v2692_v39 }
 0x894   :  { %v1654_v44 = vadd.f32 %v1651_v43, %v1642_v20  ;;  %v1672_v32 = vadd.f32 %v1669_v16, %v1663_v51  ;;  %2250 = vrcp.f32 %v1611_v14  ;;  %v2243_v29 = vpop.eup %2242 }
 0x895   :  { %v2245_v52 = vpop.eup %2244  ;;  %vm1811_vm14 = vcmp.ge.f32.partialorder %v2920_v13, 0.0 }
 0x896   :  { %v1657_v57 = vadd.f32 %v1654_v44, %v2831_v12  ;;  %v1675_v25 = vadd.f32 %v1672_v32, %v2831_v12  ;;  %v2247_v7 = vpop.eup %2246  ;;  %v1635_v26 = vadd.f32 %v2245_v52, %v2243_v29 }
 0x897   :  { %v1639_v2 = vmul.f32 %v2247_v7, %v2225_v53  ;;  %v1661_v42 = vmul.f32 %v2247_v7, %v2227_v49 }
 0x898   :  { %v1678_v27 = vadd.f32 %v1657_v57, %v1453_v0  ;;  %v1684_v24 = vadd.f32 %v1675_v25, %v1471_v17  ;;  %2252 = vrcp.f32 %v1635_v26 }
 0x899   :  { %v1643_v8 = vmul.f32 %v1639_v2, %v2626_v61  ;;  %v1664_v53 = vmul.f32 %v1661_v42, %v2626_v61  ;;  %v1472_v61 = vadd.f32 %v2862_v40, %v2831_v12 }
 0x89a   :  { %v1681_v19 = vmul.f32 0.5, %v1678_v27  ;;  %v1687_v45 = vmul.f32 0.5, %v1684_v24  ;;  %v2249_v36 = vpop.eup %2248 }
 0x89b   :  { %v1648_v34 = vmul.f32 %v2249_v36, %v2231_v60  ;;  %v1667_v22 = vmul.f32 %v2249_v36, %v2233_v54  ;;  %v1454_v60 = vadd.f32 %v2860_v10, %v2831_v12 }
 0x89c   :  { %v1701_v56 = vmul.f32 %v1681_v19, %v1681_v19  ;;  %v1704_v63 = vmul.f32 %v1687_v45, %v1687_v45  ;;  %v1742_v21 = vmul.f32 %v1687_v45, %v2840_v15  ;;  %v1739_v55 = vmul.f32 %v1681_v19, %v2692_v39 }
 0x89d   :  { %v1652_v31 = vmul.f32 %v1648_v34, %v2645_v9  ;;  %v1670_v28 = vmul.f32 %v1667_v22, %v2645_v9  ;;  %v1799_v39 = vand.u32 2147483647, %v2920_v13  ;;  %v2943_v22 = vsub.f32 %v2704_v47, %v2702_v46 }
 0x89e   :  { %v2251_v33 = vpop.eup %2250  ;;  %v1707_v62 = vadd.f32 %v1704_v63, %v1701_v56  ;;  %v2913_v3 = vadd.f32 %v1742_v21, %v1739_v55 }
 0x89f   :  { %v1655_v49 = vadd.f32 %v1652_v31, %v1643_v8  ;;  %v1673_v6 = vadd.f32 %v1670_v28, %v1664_v53  ;;  %v1641_v15 = vmul.f32 %v2251_v33, %v2237_v5  ;;  %v1662_v58 = vmul.f32 %v2251_v33, %v2239_v1 }
 0x8a0   :  { %2254 = vrsqrt.f32 %v1707_v62  ;;  %v1802_v2 = vsub.f32 0.0, %v1799_v39  ;;  %vm1712_vm8 = vcmp.eq.f32.partialorder %v1707_v62, inf  ;;  %vm1714_vm9 = vcmp.eq.f32.partialorder %v1707_v62, 0.0 }
 0x8a1   :  { %v1658_v54 = vadd.f32 %v1655_v49, %v2831_v12  ;;  %v1676_v9 = vadd.f32 %v1673_v6, %v2831_v12  ;;  %v1644_v14 = vmul.f32 %v1641_v15, %v2640_v4  ;;  %v1665_v44 = vmul.f32 %v1662_v58, %v2640_v4 }
 0x8a2   :  { %v2253_v20 = vpop.eup %2252  ;;  %v1455_v4 = vadd.f32 %v2874_v30, %v2831_v12  ;;  %v1800_v6 = vand.u32 2147483647, %v2943_v22  ;;  %vm1812_vm1 = vcmp.ge.f32.partialorder %v2943_v22, 0.0 }
 0x8a3   :  { %v1679_v51 = vadd.f32 %v1658_v54, %v1454_v60  ;;  %v1650_v43 = vmul.f32 %v2253_v20, %v2243_v29  ;;  %v1668_v16 = vmul.f32 %v2253_v20, %v2245_v52  ;;  %v1685_v5 = vadd.f32 %v1676_v9, %v1472_v61 }
 0x8a4   :  { %v1847_v29 = vand.u32 2147483647, %v2846_v37  ;;  %v2953_v60 = vsub.f32 %v2704_v47, %v2706_v48  ;;  %v1803_v54 = vsub.f32 0.0, %v1800_v6  ;;  %v1849_v47 = vand.u32 2147483647, %v2888_v23 }
 0x8a5   :  { %v1682_v10 = vmul.f32 0.5, %v1679_v51  ;;  %v1653_v1 = vmul.f32 %v1650_v43, %v2648_v11  ;;  %v1671_v32 = vmul.f32 %v1668_v16, %v2648_v11  ;;  %v1688_v0 = vmul.f32 0.5, %v1685_v5 }
 0x8a6   :  { %v1473_v11 = vadd.f32 %v2876_v41, %v2831_v12  ;;  %v1850_v30 = vsub.f32 0.0, %v1847_v29  ;;  %v1801_v51 = vand.u32 2147483647, %v2953_v60  ;;  %v1807_v43 = vmul.f32 1.442695, %v1803_v54 }
 0x8a7   :  { %v1702_v17 = vmul.f32 %v1682_v10, %v1682_v10  ;;  %v1656_v40 = vadd.f32 %v1653_v1, %v1644_v14  ;;  %v1674_v57 = vadd.f32 %v1671_v32, %v1665_v44  ;;  %v1740_v25 = vmul.f32 %v1682_v10, %v2702_v46 }
 0x8a8   :  { %v1705_v52 = vmul.f32 %v1688_v0, %v1688_v0  ;;  %v1743_v7 = vmul.f32 %v1688_v0, %v2872_v35  ;;  %v1715_v35 = vand.u32 2147483648, %v1707_v62  ;;  %v1853_v28 = vmul.f32 1.442695, %v1850_v30 }
 0x8a9   :  { %v1659_v27 = vadd.f32 %v1656_v40, %v2831_v12  ;;  %v1677_v24 = vadd.f32 %v1674_v57, %v2831_v12  ;;  %v1805_v12 = vmul.f32 1.442695, %v1802_v2  ;;  %v1848_v46 = vand.u32 2147483647, %v2880_v38 }
 0x8aa   :  { %v2255_v26 = vpop.eup %2254  ;;  %v1708_v19 = vadd.f32 %v1705_v52, %v1702_v17  ;;  %v2939_v36 = vadd.f32 %v1743_v7, %v1740_v25  ;;  %v1804_v32 = vsub.f32 0.0, %v1801_v51  ;;  %v1852_v25 = vsub.f32 0.0, %v1849_v47 }
 0x8ab   :  { %v1711_v45 = vmul.f32 %v2255_v26, %v1707_v62  ;;  %v1680_v42 = vadd.f32 %v1659_v27, %v1455_v4  ;;  %v1686_v56 = vadd.f32 %v1677_v24, %v1473_v11  ;;  %vm1813_vm3 = vcmp.ge.f32.partialorder %v2953_v60, 0.0 }
 0x8ac   :  { %2256 = vrsqrt.f32 %v1708_v19  ;;  %vm1719_vm10 = vcmp.eq.f32.partialorder %v1708_v19, inf  ;;  %v1722_v20 = vand.u32 2147483648, %v1708_v19  ;;  %vm1721_vm11 = vcmp.eq.f32.partialorder %v1708_v19, 0.0 }
 0x8ad   :  { %v1713_v63 = vsel %vm1712_vm8, %v1707_v62, %v1711_v45  ;;  %v1683_v21 = vmul.f32 0.5, %v1680_v42  ;;  %v1689_v34 = vmul.f32 0.5, %v1686_v56  ;;  %v1809_v4 = vmul.f32 1.442695, %v1804_v32 }
 0x8ae   :  { %v1716_v41 = vsel %vm1714_vm9, %v1715_v35, %v1713_v63  ;;  %v1857_v27 = vmul.f32 1.442695, %v1852_v25  ;;  %v1892_v23 = vlaneseq  ;;  %vm1900_vm8 = vcmask 7168  }
 0x8af   :  { %v1731_v55 = vmax.f32 %v1716_v41, 1e-12  ;;  %v1703_v33 = vmul.f32 %v1683_v21, %v1683_v21  ;;  %v1706_v8 = vmul.f32 %v1689_v34, %v1689_v34  ;;  %v1741_v31 = vmul.f32 %v1683_v21, %v2706_v48 }
 0x8b0   :  { %v1744_v53 = vmul.f32 %v1689_v34, %v2883_v50  ;;  %v1851_v50 = vsub.f32 0.0, %v1848_v46 }
 0x8b1   :  { %2258 = vrcp.f32 %v1731_v55  ;;  %v1709_v49 = vadd.f32 %v1706_v8, %v1703_v33 }
 0x8b2   :  { %v2947_v62 = vadd.f32 %v1744_v53, %v1741_v31  ;;  %2260 = vpow2.f32 %v1805_v12  ;;  %v1855_v44 = vmul.f32 1.442695, %v1851_v50 }
 0x8b3   :  { %2262 = vrsqrt.f32 %v1709_v49  ;;  %vm1726_vm12 = vcmp.eq.f32.partialorder %v1709_v49, inf  ;;  %v1729_v40 = vand.u32 2147483648, %v1709_v49  ;;  %vm1728_vm13 = vcmp.eq.f32.partialorder %v1709_v49, 0.0 }
 0x8b4   :  { %2264 = vpow2.f32 %v1853_v28 }
 0x8b6   :  { %v2257_v15 = vpop.eup %2256 }
 0x8b7   :  { %v1718_v58 = vmul.f32 %v2257_v15, %v1708_v19 }
 0x8b9   :  { %v1720_v61 = vsel %vm1719_vm10, %v1708_v19, %v1718_v58 }
 0x8ba   :  { %v1723_v16 = vsel %vm1721_vm11, %v1722_v20, %v1720_v61 }
 0x8bb   :  { %v2259_v9 = vpop.eup %2258  ;;  %v1732_v5 = vmax.f32 %v1723_v16, 1e-12 }
 0x8bc   :  { %v1749_v14 = vmul.f32 %v2259_v9, %v2913_v3  ;;  %v2261_v10 = vpop.eup %2260 }
 0x8bd   :  { %v2263_v1 = vpop.eup %2262  ;;  %2266 = vrcp.f32 %v1732_v5  ;;  %v1814_v17 = vadd.f32 1.0, %v2261_v10 }
 0x8be   :  { %v2959_v48 = vsub.f32 %v2899_v59, %v1749_v14  ;;  %2268 = vpow2.f32 %v1807_v43  ;;  %v1725_v39 = vmul.f32 %v2263_v1, %v1709_v49  ;;  %v2265_v0 = vpop.eup %2264 }
 0x8bf   :  { %2270 = vpow2.f32 %v1855_v44  ;;  %v1862_v7 = vadd.f32 1.0, %v2265_v0 }
 0x8c0   :  { %v1757_v57 = vand.u32 2147483647, %v2959_v48  ;;  %v1727_v3 = vsel %vm1726_vm12, %v1709_v49, %v1725_v39  ;;  %2272 = vrcp.f32 %v1814_v17  ;;  %vm1769_vm0 = vcmp.ge.f32.partialorder %v2959_v48, 0.0 }
 0x8c1   :  { %v1730_v29 = vsel %vm1728_vm13, %v1729_v40, %v1727_v3 }
 0x8c2   :  { %v1760_v52 = vsub.f32 0.0, %v1757_v57  ;;  %v1733_v26 = vmax.f32 %v1730_v29, 1e-12 }
 0x8c4   :  { %v1763_v11 = vmul.f32 1.442695, %v1760_v52  ;;  %2274 = vrcp.f32 %v1733_v26 }
 0x8c6   :  { %2276 = vpow2.f32 %v1763_v11 }
 0x8c7   :  { %2278 = vrcp.f32 %v1862_v7  ;;  %v2267_v24 = vpop.eup %2266 }
 0x8c8   :  { %2280 = vpow2.f32 %v1809_v4  ;;  %v2269_v2 = vpop.eup %2268  ;;  %v1751_v19 = vmul.f32 %v2267_v24, %v2939_v36 }
 0x8c9   :  { %2282 = vpow2.f32 %v1857_v27  ;;  %v2271_v45 = vpop.eup %2270  ;;  %v1815_v56 = vadd.f32 1.0, %v2269_v2 }
 0x8ca   :  { %v2964_v42 = vsub.f32 %v2899_v59, %v1751_v19  ;;  %v2273_v63 = vpop.eup %2272  ;;  %v1863_v30 = vadd.f32 1.0, %v2271_v45 }
 0x8cb   :  { %2284 = vrcp.f32 %v1815_v56  ;;  %v1823_v53 = vmul.f32 %v2273_v63, %v2261_v10 }
 0x8cc   :  { %v1758_v35 = vand.u32 2147483647, %v2964_v42  ;;  %2286 = vrcp.f32 %v1863_v30  ;;  %vm1770_vm5 = vcmp.ge.f32.partialorder %v2964_v42, 0.0 }
 0x8cd   :  { %v1826_v15 = vsel %vm1811_vm14, %v2273_v63, %v1823_v53 }
 0x8ce   :  { %v2275_v21 = vpop.eup %2274  ;;  %v1761_v34 = vsub.f32 0.0, %v1758_v35 }
 0x8cf   :  { %v1753_v12 = vmul.f32 %v2275_v21, %v2947_v62 }
 0x8d0   :  { %v2277_v41 = vpop.eup %2276  ;;  %v1765_v33 = vmul.f32 1.442695, %v1761_v34 }
 0x8d1   :  { %v2279_v55 = vpop.eup %2278  ;;  %v1772_v8 = vadd.f32 1.0, %v2277_v41  ;;  %v2969_v31 = vsub.f32 %v2899_v59, %v1753_v12  ;;  %v1829_v59 = vadd.f32 1e-09, %v1826_v15 }
 0x8d2   :  { %v2281_v36 = vpop.eup %2280  ;;  %2288 = vpow2.f32 %v1765_v33  ;;  %v1871_v49 = vmul.f32 %v2279_v55, %v2265_v0 }
 0x8d3   :  { %v2283_v28 = vpop.eup %2282  ;;  %v1759_v6 = vand.u32 2147483647, %v2969_v31  ;;  %2290 = vrcp.f32 %v1772_v8  ;;  %v1816_v46 = vadd.f32 1.0, %v2281_v36  ;;  %vm1771_vm6 = vcmp.ge.f32.partialorder %v2969_v31, 0.0 }
 0x8d4   :  { %v1864_v54 = vadd.f32 1.0, %v2283_v28  ;;  %v1874_v58 = vsel %vm1859_vm15, %v2279_v55, %v1871_v49 }
 0x8d5   :  { %v1762_v62 = vsub.f32 0.0, %v1759_v6  ;;  %2292 = vrcp.f32 %v1816_v46  ;;  %v2285_v20 = vpop.eup %2284  ;;  %v1877_v61 = vadd.f32 1e-09, %v1874_v58 }
 0x8d6   :  { %v2287_v9 = vpop.eup %2286  ;;  %v1824_v5 = vmul.f32 %v2285_v20, %v2269_v2 }
 0x8d7   :  { %v1767_v50 = vmul.f32 1.442695, %v1762_v62  ;;  %v1872_v37 = vmul.f32 %v2287_v9, %v2271_v45 }
 0x8d8   :  { %v1827_v1 = vsel %vm1812_vm1, %v2285_v20, %v1824_v5 }
 0x8d9   :  { %2294 = vpow2.f32 %v1767_v50  ;;  %v1875_v39 = vsel %vm1860_vm2, %v2287_v9, %v1872_v37  ;;  %v1830_v40 = vadd.f32 1e-09, %v1827_v1 }
 0x8da   :  { %2296 = vrcp.f32 %v1864_v54  ;;  %v1878_v48 = vadd.f32 1e-09, %v1875_v39 }
 0x8db   :  { %2298 = vlog2.f32 %v1829_v59 }
 0x8dc   :  { %v2289_v51 = vpop.eup %2288  ;;  %2300 = vlog2.f32 %v1877_v61 }
 0x8dd   :  { %v2291_v43 = vpop.eup %2290  ;;  %v1773_v16 = vadd.f32 1.0, %v2289_v51 }
 0x8de   :  { %v1781_v13 = vmul.f32 %v2291_v43, %v2277_v41  ;;  %v1893_v41 = vshrl.u32 %v1892_v23, 7 }
 0x8df   :  { %2302 = vrcp.f32 %v1773_v16  ;;  %v2293_v44 = vpop.eup %2292 }
 0x8e0   :  { %v1784_v14 = vsel %vm1769_vm0, %v2291_v43, %v1781_v13  ;;  %v1825_v17 = vmul.f32 %v2293_v44, %v2281_v36  ;;  %vm1894_vm7 = vcmp.lt.s32.totalorder %v1893_v41, 4 }
 0x8e1   :  { %v1787_v10 = vadd.f32 1e-09, %v1784_v14  ;;  %v1967_v49 = vsel %vm1894_vm7, 1.0, %v2349_v18 }
 0x8e2   :  { %v1828_v29 = vsel %vm1813_vm3, %v2293_v44, %v1825_v17 }
 0x8e3   :  { %v2295_v47 = vpop.eup %2294  ;;  %2304 = vlog2.f32 %v1787_v10  ;;  %v1831_v26 = vadd.f32 1e-09, %v1828_v29 }
 0x8e4   :  { %v2297_v32 = vpop.eup %2296  ;;  %v1774_v0 = vadd.f32 1.0, %v2295_v47 }
 0x8e5   :  { %v2299_v57 = vpop.eup %2298  ;;  %v1873_v3 = vmul.f32 %v2297_v32, %v2283_v28 }
 0x8e6   :  { %2306 = vrcp.f32 %v1774_v0  ;;  %v2301_v25 = vpop.eup %2300  ;;  %v1833_v38 = vmul.f32 0.6931472, %v2299_v57 }
 0x8e7   :  { %2308 = vlog2.f32 %v1830_v40  ;;  %v1876_v7 = vsel %vm1861_vm4, %v2297_v32, %v1873_v3  ;;  %v1881_v4 = vmul.f32 0.6931472, %v2301_v25 }
 0x8e8   :  { %2310 = vlog2.f32 %v1878_v48  ;;  %v1879_v2 = vadd.f32 1e-09, %v1876_v7  ;;  %v1838_v45 = vmul.f32 0.1, %v1833_v38 }
 0x8e9   :  { %v2303_v22 = vpop.eup %2302  ;;  %v1886_v35 = vmul.f32 0.1, %v1881_v4 }
 0x8ea   :  { %v1782_v52 = vmul.f32 %v2303_v22, %v2289_v51 }
 0x8ec   :  { %v1785_v11 = vsel %vm1770_vm5, %v2303_v22, %v1782_v52 }
 0x8ed   :  { %v2305_v27 = vpop.eup %2304  ;;  %v1788_v24 = vadd.f32 1e-09, %v1785_v11 }
 0x8ee   :  { %v1791_v19 = vmul.f32 0.6931472, %v2305_v27 }
 0x8ef   :  { %2312 = vlog2.f32 %v1788_v24 }
 0x8f0   :  { %v2307_v60 = vpop.eup %2306  ;;  %2314 = vlog2.f32 %v1831_v26  ;;  %v1841_v56 = vadd.f32 %v1838_v45, %v1791_v19 }
 0x8f1   :  { %v1783_v63 = vmul.f32 %v2307_v60, %v2295_v47  ;;  %2316 = vlog2.f32 %v1879_v2  ;;  %v2309_v42 = vpop.eup %2308 }
 0x8f2   :  { %v1889_v30 = vadd.f32 %v1886_v35, %v1841_v56  ;;  %v2311_v12 = vpop.eup %2310  ;;  %v1835_v55 = vmul.f32 0.6931472, %v2309_v42 }
 0x8f3   :  { %v1786_v21 = vsel %vm1771_vm6, %v2307_v60, %v1783_v63  ;;  %v1883_v33 = vmul.f32 0.6931472, %v2311_v12 }
 0x8f4   :  { %v1789_v34 = vadd.f32 1e-09, %v1786_v21  ;;  %v1839_v28 = vmul.f32 0.1, %v1835_v55  ;;  %v1897_v54 = vmul.f32 %v1967_v49, %v1889_v30 }
 0x8f5   :  { %v1887_v62 = vmul.f32 0.1, %v1883_v33 }
 0x8f6   :  { %2318 = vlog2.f32 %v1789_v34  ;;  %v1901_v9 = vsel %vm1900_vm8, %v1897_v54, 0.0 }
 0x8f9   :  { %v2313_v8 = vpop.eup %2312 }
 0x8fa   :  { %v2315_v36 = vpop.eup %2314  ;;  %v1793_v53 = vmul.f32 0.6931472, %v2313_v8 }
 0x8fb   :  { %v2317_v6 = vpop.eup %2316  ;;  %v1837_v31 = vmul.f32 0.6931472, %v2315_v36 }
 0x8fc   :  { %v1842_v46 = vadd.f32 %v1839_v28, %v1793_v53  ;;  %v1885_v58 = vmul.f32 0.6931472, %v2317_v6 }
 0x8fd   :  { %v1840_v61 = vmul.f32 0.1, %v1837_v31 }
 0x8fe   :  { %v1890_v15 = vadd.f32 %v1887_v62, %v1842_v46  ;;  %v1888_v16 = vmul.f32 0.1, %v1885_v58 }
 0x900   :  { %v2319_v50 = vpop.eup %2318  ;;  %v1898_v59 = vmul.f32 %v1967_v49, %v1890_v15 }
 0x901   :  { %v1795_v20 = vmul.f32 0.6931472, %v2319_v50 }
 0x902   :  { %v1902_v51 = vsel %vm1900_vm8, %v1898_v59, 0.0 }
 0x903   :  { %v1843_v43 = vadd.f32 %v1840_v61, %v1795_v20  ;;  %v1903_v5 = vadd.f32 %v1902_v51, %v1901_v9 }
 0x905   :  { %v1891_v13 = vadd.f32 %v1888_v16, %v1843_v43 }
 0x907   :  { %v1899_v37 = vmul.f32 %v1967_v49, %v1891_v13 }
 0x909   :  { %v1904_v18 = vsel %vm1900_vm8, %v1899_v37, 0.0 }
 0x90a   :  { %v1905_v14 = vadd.f32 %v1904_v18, %v1903_v5 }
 0x90c   :  { %1906 = vadd.xlane.f32.xlu0 %v1905_v14 }
 0x999   :  { %v1907_v10 = vpop.xlane.xlu0 %1906 }
 0x99a   :  { %v1908_v44 = vrot.slane %v1907_v10, 4 }
 0x99c   :  { %v1909_v1 = vadd.f32 %v1908_v44, %v1907_v10 }
 0x99e   :  { %v1910_v47 = vrot.slane %v1909_v1, 2 }
 0x9a0   :  { %v1911_v32 = vadd.f32 %v1910_v47, %v1909_v1 }
 0x9a2   :  { %v1912_v39 = vrot.slane %v1911_v32, 1 }
 0x9a4   :  { %v1913_v0 = vadd.f32 %v1912_v39, %v1911_v32 }
 0x9a6   :  { %2141 = vpush %v1913_v0 }
 0x9d7   :  { %s2142_s24 = spop %2141 }
 0x9d8   :  { %s1915_s25 = ssub.f32 0.0, %s2142_s24 }
 0x9da   :  { %s1916_s26 = smul.f32 0.083333336, %s1915_s25 }
 0x9dc   :  { %1918 = sst [smem:[#allocation5]] %s1916_s26 }
 0x9dd   :  { %2341 = shalt.err (!%p2338_p7)
}
 0x9de   :  { %s2352_s7 = smov [#allocation5]  }
 0x9df   :  { %1926 = dma.smem_to_hbm %s2352_s7, 16, %s2999_s5, [#allocation3]  }
 0x9e0   :  { %2344 = dma.done.wait [#allocation3], 16  }
 0x9e1   :  { %2345 = vsyncadd [#allocation3], 4294967280 }
 0x9e2   :  { %1930 = sfence }
 0x9e3   :  { %1931 = vsyncpa [#allocation3], 1 }
 0x9e4   :  { %1932 = vsyncpa [#allocation4], 1 }

</bundles_post_ra>
